<compile_context>
chip_gen: v5e
topology: v5e:2x2
jax: 0.10.0
libtpu: 0.0.40
codegen_flags: <defaults>
</compile_context>

<pallas_src>
import functools
import math

import jax
import jax.numpy as jnp
from jax.experimental import pallas as pl
from jax.experimental.pallas import tpu as pltpu

SQRT_HALF = math.sqrt(0.5)
LN_EPS = 1e-5


def _layernorm(x, gamma, beta):
    # x: (R, H); gamma/beta: (1, H)
    mean = jnp.mean(x, axis=-1, keepdims=True)
    var = jnp.mean((x - mean) ** 2, axis=-1, keepdims=True)
    return (x - mean) * jax.lax.rsqrt(var + LN_EPS) * gamma + beta


def _gelu_exact(x):
    # torch.nn.GELU() default (erf-based); tanh approx would risk 1e-4 parity
    return 0.5 * x * (1.0 + jax.lax.erf(x * 0.7071067811865476))


def transformer_layer_kernel(
    x_ref,        # (TB, S, H)  token-major input block
    mask_ref,     # (TB, S)     radial mask (lane-dense, contiguous DMA)
    wqkv_ref,     # (H, 3H)     fused q/k/v weights, q part pre-scaled by 1/sqrt(hd)
    wo_ref,       # (H, H)      output projection (pre-transposed)
    ln1g_ref, ln1b_ref,         # (1, H)
    ln2g_ref, ln2b_ref,         # (1, H)
    w1_ref,       # (H, I)      (pre-transposed)
    b1_ref,       # (1, I)
    w2_ref,       # (I, H)      (pre-transposed)
    b2_ref,       # (1, H)
    o_ref,        # (TB, S, H)
    *, num_heads: int, tb: int, seq: int, hidden: int,
):
    R = tb * seq
    hd = hidden // num_heads

    # (TB, S, H) -> (TB*S, H): pure leading-dim merge, no lane relayout.
    x = x_ref[...].reshape(R, hidden)                            # (R, H)

    # ---- Attention block ----
    x1 = _layernorm(x, ln1g_ref[...], ln1b_ref[...])             # (R, H)

    # Single wide MXU pass for q/k/v (scale already folded into the q columns).
    qkv = jnp.dot(x1, wqkv_ref[...], preferred_element_type=jnp.float32)  # (R, 3H)

    # One combined head-split relayout for q, k and v together.
    qkv_h = qkv.reshape(R, 3 * num_heads, hd)
    qkv_h = jnp.transpose(qkv_h, (1, 0, 2))                      # (3*nh, R, hd)
    qh = qkv_h[0 * num_heads:1 * num_heads]                      # (nh, R, hd)
    kh = qkv_h[1 * num_heads:2 * num_heads]
    vh = qkv_h[2 * num_heads:3 * num_heads]

    # Radial mask on values, applied per (center, token) in the head layout.
    mask = mask_ref[...]                                         # (TB, S)
    vh = vh.reshape(num_heads, tb, seq, hd) * mask[None, :, :, None]

    # Leading-dim reshapes only (batch index = head * tb + center).
    qh = qh.reshape(num_heads * tb, seq, hd)
    kh = kh.reshape(num_heads * tb, seq, hd)
    vh = vh.reshape(num_heads * tb, seq, hd)

    # Batched per-(center, head) attention in single 3-D dots (leading batch dim).
    logits = jnp.einsum("bqd,bkd->bqk", qh, kh,
                        preferred_element_type=jnp.float32)      # (nh*tb, S, S)
    lmax = jnp.max(logits, axis=-1, keepdims=True)
    p = jnp.exp(logits - lmax)
    inv = 1.0 / jnp.sum(p, axis=-1, keepdims=True)  # exact; approx rcp risks 1e-4 parity
    p = p * inv
    attnh = jnp.einsum("bqk,bkd->bqd", p, vh,
                       preferred_element_type=jnp.float32)       # (nh*tb, S, hd)

    # Merge heads back: (nh*tb, S, hd) -> (R, H)  (the second and last transpose).
    attn = attnh.reshape(num_heads, R, hd)
    attn = jnp.transpose(attn, (1, 0, 2)).reshape(R, hidden)

    a = jnp.dot(attn, wo_ref[...], preferred_element_type=jnp.float32)
    r1 = (a + x) * SQRT_HALF

    # ---- Feed-forward block ----
    x2 = _layernorm(r1, ln2g_ref[...], ln2b_ref[...])
    h = jnp.dot(x2, w1_ref[...], preferred_element_type=jnp.float32) + b1_ref[...]
    h = _gelu_exact(h)
    f = jnp.dot(h, w2_ref[...], preferred_element_type=jnp.float32) + b2_ref[...]
    out = (f + r1) * SQRT_HALF                                   # (R, H)

    # (R, H) -> (TB, S, H): pure leading-dim split, no relayout.
    o_ref[...] = out.reshape(tb, seq, hidden).astype(o_ref.dtype)


def _choose_tb(batch, seq, num_heads, vmem_budget_bytes=36 << 20):
    """Centers per grid step.

    Constraints / preferences:
      * TB must divide (padded) batch.
      * The mask block is (TB, S), so TB is second-minor there: TB must be a
        multiple of 8 or equal to batch.
      * VMEM budget: the dominant live cost is the per-head (seq, hd) tensors
        (q/k/v heads, logits/probs, attn out), whose tiny minor dims pad to
        128 lanes in vregs/VMEM.  Budget ~36 MiB of live intermediates so the
        block (plus double-buffered I/O) stays under v7x's 64 MiB physical
        VMEM and the explicit 48 MiB scoped limit.
      * Prefer an EVEN grid count (balanced across v7x's two TensorCores via
        the "parallel" axis), then >= 2 steps, once blocks are big enough to
        amortise the ~0.35 us per-step overhead.
    """
    lane_bytes = 128 * 4
    # ~5 simultaneously-live per-head tensors (q/k/v, logits|probs, attn out)
    # padded to 128 lanes, plus ~8 (R, <=128-lane) 2-D intermediates.
    per_row_bytes = (5 * num_heads + 8) * lane_bytes
    max_rows = max(seq, vmem_budget_bytes // per_row_bytes)

    candidates = [batch] + [tb for tb in range(8, batch, 8) if batch % tb == 0]
    fitting = [tb for tb in candidates if tb * seq <= max_rows]
    if not fitting:
        return min(candidates)

    def steps(tb):
        return batch // tb

    even_big = [tb for tb in fitting if steps(tb) % 2 == 0 and tb * seq >= 256]
    if even_big:
        return max(even_big)
    multi_big = [tb for tb in fitting if steps(tb) >= 2 and tb * seq >= 256]
    if multi_big:
        return max(multi_big)
    return max(fitting)


def transformer_layer(inputs, radial_mask, params, num_heads):
    B, S, H = inputs.shape
    I = params["w1"].shape[1]
    assert H % num_heads == 0
    hd = H // num_heads
    scale = 1.0 / math.sqrt(hd)

    # Pad batch to a multiple of 8 (when it isn't one and is large enough to
    # matter) so a splittable, multiple-of-8 block size always exists.
    # Zero rows are harmless through LayerNorm/softmax and are sliced off.
    B_pad = B
    inputs_p, mask_p = inputs, radial_mask
    if B > 8 and B % 8 != 0:
        B_pad = ((B + 7) // 8) * 8
        pad = B_pad - B
        inputs_p = jnp.pad(inputs, ((0, pad), (0, 0), (0, 0)))
        mask_p = jnp.pad(radial_mask, ((0, pad), (0, 0)))

    TB = _choose_tb(B_pad, S, num_heads)
    assert B_pad % TB == 0
    grid = B_pad // TB

    # Fuse q/k/v weights into one (H, 3H) matrix; fold 1/sqrt(hd) into Wq.
    w_in = params["w_in"]
    w_qkv = jnp.concatenate([w_in[:, :H] * scale, w_in[:, H:]], axis=1)

    kernel = functools.partial(
        transformer_layer_kernel,
        num_heads=num_heads, tb=TB, seq=S, hidden=H)

    out = pl.pallas_call(
        kernel,
        out_shape=jax.ShapeDtypeStruct((B_pad, S, H), inputs.dtype),
        grid_spec=pltpu.PrefetchScalarGridSpec(
            num_scalar_prefetch=0,
            grid=(grid,),
            in_specs=[
                pl.BlockSpec((TB, S, H), lambda b: (b, 0, 0)),     # inputs
                pl.BlockSpec((TB, S), lambda b: (b, 0)),           # radial mask
                pl.BlockSpec((H, 3 * H), lambda b: (0, 0)),        # fused w_qkv
                pl.BlockSpec((H, H), lambda b: (0, 0)),            # w_out
                pl.BlockSpec((1, H), lambda b: (0, 0)),            # ln1 gamma
                pl.BlockSpec((1, H), lambda b: (0, 0)),            # ln1 beta
                pl.BlockSpec((1, H), lambda b: (0, 0)),            # ln2 gamma
                pl.BlockSpec((1, H), lambda b: (0, 0)),            # ln2 beta
                pl.BlockSpec((H, I), lambda b: (0, 0)),            # w1
                pl.BlockSpec((1, I), lambda b: (0, 0)),            # b1
                pl.BlockSpec((I, H), lambda b: (0, 0)),            # w2
                pl.BlockSpec((1, H), lambda b: (0, 0)),            # b2
            ],
            out_specs=pl.BlockSpec((TB, S, H), lambda b: (b, 0, 0)),
        ),
        compiler_params=pltpu.CompilerParams(
            dimension_semantics=("parallel",),
            # Above the 16 MiB (v5e) / 32 MiB (v6e, v7x) scoped defaults,
            # below v7x's 64 MiB physical VMEM.
            vmem_limit_bytes=48 * 1024 * 1024,
        ),
    )(
        inputs_p, mask_p,
        w_qkv, params["w_out"],
        params["ln1_g"], params["ln1_b"],
        params["ln2_g"], params["ln2_b"],
        params["w1"], params["b1"], params["w2"], params["b2"],
    )
    return out[:B] if B_pad != B else out


def reference_forward(inputs, radial_mask, params, num_heads):
    """Pure-JAX mirror of the PyTorch forward (eval mode)."""
    B, S, H = inputs.shape
    hd = H // num_heads

    def ln(x, g, b):
        m = jnp.mean(x, axis=-1, keepdims=True)
        v = jnp.mean((x - m) ** 2, axis=-1, keepdims=True)
        return (x - m) / jnp.sqrt(v + LN_EPS) * g + b

    x1 = ln(inputs, params["ln1_g"], params["ln1_b"])
    qkv = x1 @ params["w_in"]
    q, k, v = jnp.split(qkv, 3, axis=-1)
    q = q.reshape(B, S, num_heads, hd).transpose(0, 2, 1, 3)
    k = k.reshape(B, S, num_heads, hd).transpose(0, 2, 1, 3)
    v = v.reshape(B, S, num_heads, hd).transpose(0, 2, 1, 3)
    v = v * radial_mask[:, None, :, None]
    logits = (q @ k.transpose(0, 1, 3, 2)) / math.sqrt(hd)
    p = jax.nn.softmax(logits, axis=-1)
    attn = (p @ v).transpose(0, 2, 1, 3).reshape(B, S, H)
    a = attn @ params["w_out"]
    r1 = (a + inputs) * SQRT_HALF

    x2 = ln(r1, params["ln2_g"], params["ln2_b"])
    h = x2 @ params["w1"] + params["b1"]
    h = 0.5 * h * (1.0 + jax.lax.erf(h / math.sqrt(2.0)))
    f = h @ params["w2"] + params["b2"]
    return (f + r1) * SQRT_HALF


if __name__ == "__main__":
    # Small shapes consistent with nanoPET: centers x neighbors x hidden
    B, S, H, I, NH = 2, 8, 32, 64, 4

    key = jax.random.PRNGKey(0)
    ks = jax.random.split(key, 8)

    f32 = jnp.float32
    params = {
        # stored pre-transposed so that x @ W reproduces torch's x @ W_torch^T
        "w_in": 0.1 * jax.random.normal(ks[0], (H, 3 * H), f32),
        "w_out": 0.1 * jax.random.normal(ks[1], (H, H), f32),
        "ln1_g": jnp.ones((1, H), f32),
        "ln1_b": jnp.zeros((1, H), f32),
        "ln2_g": jnp.ones((1, H), f32),
        "ln2_b": jnp.zeros((1, H), f32),
        "w1": 0.1 * jax.random.normal(ks[2], (H, I), f32),
        "b1": 0.05 * jax.random.normal(ks[3], (1, I), f32),
        "w2": 0.1 * jax.random.normal(ks[4], (I, H), f32),
        "b2": 0.05 * jax.random.normal(ks[5], (1, H), f32),
    }

    inputs = jax.random.normal(ks[6], (B, S, H), f32)
    radial_mask = jax.nn.sigmoid(jax.random.normal(ks[7], (B, S), f32))

    out = transformer_layer(inputs, radial_mask, params, NH)
    out = jax.block_until_ready(out)

    ref = reference_forward(inputs, radial_mask, params, NH)
    assert out.shape == (B, S, H)
    assert jnp.allclose(out, ref, atol=1e-4, rtol=1e-4), (
        f"max abs err = {jnp.max(jnp.abs(out - ref))}")

    print("KERNEL_OK")
</pallas_src>

<mosaic_0001>
module attributes {stable_mosaic.version = 11 : i64} {
  func.func @transformer_layer_kernel(%arg0: i32, %arg1: memref<2x8x32xf32, #tpu.memory_space<vmem>>, %arg2: memref<2x8xf32, #tpu.memory_space<vmem>>, %arg3: memref<32x96xf32, #tpu.memory_space<vmem>>, %arg4: memref<32x32xf32, #tpu.memory_space<vmem>>, %arg5: memref<1x32xf32, #tpu.memory_space<vmem>>, %arg6: memref<1x32xf32, #tpu.memory_space<vmem>>, %arg7: memref<1x32xf32, #tpu.memory_space<vmem>>, %arg8: memref<1x32xf32, #tpu.memory_space<vmem>>, %arg9: memref<32x64xf32, #tpu.memory_space<vmem>>, %arg10: memref<1x64xf32, #tpu.memory_space<vmem>>, %arg11: memref<64x32xf32, #tpu.memory_space<vmem>>, %arg12: memref<1x32xf32, #tpu.memory_space<vmem>>, %arg13: memref<2x8x32xf32, #tpu.memory_space<vmem>>) attributes {dimension_semantics = [#tpu.dimension_semantics<parallel>], iteration_bounds = array<i64: 1>, scalar_prefetch = 0 : i64, scratch_operands = 0 : i64, tpu.core_type = #tpu.core_type<tc>, window_params = [{transform_indices = @transform_0, window_bounds = array<i64: 2, 8, 32>}, {transform_indices = @transform_1, window_bounds = array<i64: 2, 8>}, {pipeline_mode = #tpu.pipeline_mode<synchronous>, transform_indices = @transform_2, window_bounds = array<i64: 32, 96>}, {pipeline_mode = #tpu.pipeline_mode<synchronous>, transform_indices = @transform_3, window_bounds = array<i64: 32, 32>}, {pipeline_mode = #tpu.pipeline_mode<synchronous>, transform_indices = @transform_4, window_bounds = array<i64: 1, 32>}, {pipeline_mode = #tpu.pipeline_mode<synchronous>, transform_indices = @transform_5, window_bounds = array<i64: 1, 32>}, {pipeline_mode = #tpu.pipeline_mode<synchronous>, transform_indices = @transform_6, window_bounds = array<i64: 1, 32>}, {pipeline_mode = #tpu.pipeline_mode<synchronous>, transform_indices = @transform_7, window_bounds = array<i64: 1, 32>}, {pipeline_mode = #tpu.pipeline_mode<synchronous>, transform_indices = @transform_8, window_bounds = array<i64: 32, 64>}, {pipeline_mode = #tpu.pipeline_mode<synchronous>, transform_indices = @transform_9, window_bounds = array<i64: 1, 64>}, {pipeline_mode = #tpu.pipeline_mode<synchronous>, transform_indices = @transform_10, window_bounds = array<i64: 64, 32>}, {pipeline_mode = #tpu.pipeline_mode<synchronous>, transform_indices = @transform_11, window_bounds = array<i64: 1, 32>}, {transform_indices = @transform_12, window_bounds = array<i64: 2, 8, 32>}]} {
    %c0 = arith.constant 0 : index
    %c0_0 = arith.constant 0 : index
    %c0_1 = arith.constant 0 : index
    %0 = vector.load %arg1[%c0, %c0_0, %c0_1] : memref<2x8x32xf32, #tpu.memory_space<vmem>>, vector<2x8x32xf32>
    %1 = vector.shape_cast %0 : vector<2x8x32xf32> to vector<16x32xf32>
    %c0_2 = arith.constant 0 : index
    %c0_3 = arith.constant 0 : index
    %2 = vector.load %arg5[%c0_2, %c0_3] : memref<1x32xf32, #tpu.memory_space<vmem>>, vector<1x32xf32>
    %c0_4 = arith.constant 0 : index
    %c0_5 = arith.constant 0 : index
    %3 = vector.load %arg6[%c0_4, %c0_5] : memref<1x32xf32, #tpu.memory_space<vmem>>, vector<1x32xf32>
    %cst = arith.constant dense<0.000000e+00> : vector<16xf32>
    %4 = vector.multi_reduction <add>, %1, %cst [1] : vector<16x32xf32> to vector<16xf32>
    %5 = vector.shape_cast %4 : vector<16xf32> to vector<16x1xf32>
    %cst_6 = arith.constant 3.200000e+01 : f32
    %6 = vector.broadcast %cst_6 : f32 to vector<16x1xf32>
    %7 = arith.divf %5, %6 : vector<16x1xf32>
    %8 = vector.broadcast %7 : vector<16x1xf32> to vector<16x32xf32>
    %9 = arith.subf %1, %8 : vector<16x32xf32>
    %10 = arith.mulf %9, %9 : vector<16x32xf32>
    %cst_7 = arith.constant dense<0.000000e+00> : vector<16xf32>
    %11 = vector.multi_reduction <add>, %10, %cst_7 [1] : vector<16x32xf32> to vector<16xf32>
    %12 = vector.shape_cast %11 : vector<16xf32> to vector<16x1xf32>
    %cst_8 = arith.constant 3.200000e+01 : f32
    %13 = vector.broadcast %cst_8 : f32 to vector<16x1xf32>
    %14 = arith.divf %12, %13 : vector<16x1xf32>
    %15 = vector.broadcast %7 : vector<16x1xf32> to vector<16x32xf32>
    %16 = arith.subf %1, %15 : vector<16x32xf32>
    %cst_9 = arith.constant 9.99999974E-6 : f32
    %17 = vector.broadcast %cst_9 : f32 to vector<16x1xf32>
    %18 = arith.addf %14, %17 : vector<16x1xf32>
    %19 = math.rsqrt %18 : vector<16x1xf32>
    %20 = vector.broadcast %19 : vector<16x1xf32> to vector<16x32xf32>
    %21 = arith.mulf %16, %20 : vector<16x32xf32>
    %22 = vector.broadcast %2 : vector<1x32xf32> to vector<16x32xf32>
    %23 = arith.mulf %21, %22 : vector<16x32xf32>
    %24 = vector.broadcast %3 : vector<1x32xf32> to vector<16x32xf32>
    %25 = arith.addf %23, %24 : vector<16x32xf32>
    %c0_10 = arith.constant 0 : index
    %c0_11 = arith.constant 0 : index
    %26 = vector.load %arg3[%c0_10, %c0_11] : memref<32x96xf32, #tpu.memory_space<vmem>>, vector<32x96xf32>
    %cst_12 = arith.constant dense<0.000000e+00> : vector<16x96xf32>
    %27 = tpu.matmul %25, %26, %cst_12 {dimension_numbers = #tpu.dot_dimension_numbers<[1], [0], [0], [1], [0, 0, 1, 1], [], []>} : vector<16x32xf32>, vector<32x96xf32>, vector<16x96xf32> -> vector<16x96xf32>
    %28 = vector.shape_cast %27 : vector<16x96xf32> to vector<16x12x8xf32>
    %29 = tpu.transpose %28, [1, 0, 2] : vector<16x12x8xf32> -> vector<12x16x8xf32>
    %30 = vector.extract_strided_slice %29 {offsets = [0, 0, 0], sizes = [4, 16, 8], strides = [1, 1, 1]} : vector<12x16x8xf32> to vector<4x16x8xf32>
    %31 = vector.extract_strided_slice %29 {offsets = [4, 0, 0], sizes = [4, 16, 8], strides = [1, 1, 1]} : vector<12x16x8xf32> to vector<4x16x8xf32>
    %32 = vector.extract_strided_slice %29 {offsets = [8, 0, 0], sizes = [4, 16, 8], strides = [1, 1, 1]} : vector<12x16x8xf32> to vector<4x16x8xf32>
    %c0_13 = arith.constant 0 : index
    %c0_14 = arith.constant 0 : index
    %33 = vector.load %arg2[%c0_13, %c0_14] : memref<2x8xf32, #tpu.memory_space<vmem>>, vector<2x8xf32>
    %34 = vector.shape_cast %32 : vector<4x16x8xf32> to vector<4x2x8x8xf32>
    %35 = vector.shape_cast %33 : vector<2x8xf32> to vector<1x2x8x1xf32>
    %36 = vector.broadcast %35 : vector<1x2x8x1xf32> to vector<4x2x8x8xf32>
    %37 = arith.mulf %34, %36 : vector<4x2x8x8xf32>
    %38 = vector.shape_cast %30 : vector<4x16x8xf32> to vector<8x8x8xf32>
    %39 = vector.shape_cast %31 : vector<4x16x8xf32> to vector<8x8x8xf32>
    %40 = vector.shape_cast %37 : vector<4x2x8x8xf32> to vector<8x8x8xf32>
    "tpu.trace_start"() <{level = 10 : i32, message = "bqd,bkd->bqk"}> : () -> ()
    %cst_15 = arith.constant dense<0.000000e+00> : vector<8x8x8xf32>
    %41 = tpu.matmul %38, %39, %cst_15 {dimension_numbers = #tpu.dot_dimension_numbers<[2], [2], [1], [1], [0, 0, 0, 1, 1, 1], [0], [0]>} : vector<8x8x8xf32>, vector<8x8x8xf32>, vector<8x8x8xf32> -> vector<8x8x8xf32>
    "tpu.trace_stop"() : () -> ()
    %cst_16 = arith.constant dense<0xFF800000> : vector<8x8xf32>
    %42 = vector.multi_reduction <maximumf>, %41, %cst_16 [2] : vector<8x8x8xf32> to vector<8x8xf32>
    %43 = vector.shape_cast %42 : vector<8x8xf32> to vector<8x8x1xf32>
    %44 = vector.broadcast %43 : vector<8x8x1xf32> to vector<8x8x8xf32>
    %45 = arith.subf %41, %44 : vector<8x8x8xf32>
    %46 = math.exp %45 : vector<8x8x8xf32>
    %cst_17 = arith.constant dense<0.000000e+00> : vector<8x8xf32>
    %47 = vector.multi_reduction <add>, %46, %cst_17 [2] : vector<8x8x8xf32> to vector<8x8xf32>
    %48 = vector.shape_cast %47 : vector<8x8xf32> to vector<8x8x1xf32>
    %cst_18 = arith.constant 1.000000e+00 : f32
    %49 = vector.broadcast %cst_18 : f32 to vector<8x8x1xf32>
    %50 = arith.divf %49, %48 : vector<8x8x1xf32>
    %51 = vector.broadcast %50 : vector<8x8x1xf32> to vector<8x8x8xf32>
    %52 = arith.mulf %46, %51 : vector<8x8x8xf32>
    "tpu.trace_start"() <{level = 10 : i32, message = "bqk,bkd->bqd"}> : () -> ()
    %cst_19 = arith.constant dense<0.000000e+00> : vector<8x8x8xf32>
    %53 = tpu.matmul %52, %40, %cst_19 {dimension_numbers = #tpu.dot_dimension_numbers<[2], [1], [1], [2], [0, 0, 0, 1, 1, 2], [0], [0]>} : vector<8x8x8xf32>, vector<8x8x8xf32>, vector<8x8x8xf32> -> vector<8x8x8xf32>
    "tpu.trace_stop"() : () -> ()
    %54 = vector.shape_cast %53 : vector<8x8x8xf32> to vector<4x16x8xf32>
    %55 = tpu.transpose %54, [1, 0, 2] : vector<4x16x8xf32> -> vector<16x4x8xf32>
    %56 = vector.shape_cast %55 : vector<16x4x8xf32> to vector<16x32xf32>
    %c0_20 = arith.constant 0 : index
    %c0_21 = arith.constant 0 : index
    %57 = vector.load %arg4[%c0_20, %c0_21] : memref<32x32xf32, #tpu.memory_space<vmem>>, vector<32x32xf32>
    %cst_22 = arith.constant dense<0.000000e+00> : vector<16x32xf32>
    %58 = tpu.matmul %56, %57, %cst_22 {dimension_numbers = #tpu.dot_dimension_numbers<[1], [0], [0], [1], [0, 0, 1, 1], [], []>} : vector<16x32xf32>, vector<32x32xf32>, vector<16x32xf32> -> vector<16x32xf32>
    %59 = arith.addf %58, %1 : vector<16x32xf32>
    %cst_23 = arith.constant 0.707106769 : f32
    %60 = vector.broadcast %cst_23 : f32 to vector<16x32xf32>
    %61 = arith.mulf %59, %60 : vector<16x32xf32>
    %c0_24 = arith.constant 0 : index
    %c0_25 = arith.constant 0 : index
    %62 = vector.load %arg7[%c0_24, %c0_25] : memref<1x32xf32, #tpu.memory_space<vmem>>, vector<1x32xf32>
    %c0_26 = arith.constant 0 : index
    %c0_27 = arith.constant 0 : index
    %63 = vector.load %arg8[%c0_26, %c0_27] : memref<1x32xf32, #tpu.memory_space<vmem>>, vector<1x32xf32>
    %cst_28 = arith.constant dense<0.000000e+00> : vector<16xf32>
    %64 = vector.multi_reduction <add>, %61, %cst_28 [1] : vector<16x32xf32> to vector<16xf32>
    %65 = vector.shape_cast %64 : vector<16xf32> to vector<16x1xf32>
    %cst_29 = arith.constant 3.200000e+01 : f32
    %66 = vector.broadcast %cst_29 : f32 to vector<16x1xf32>
    %67 = arith.divf %65, %66 : vector<16x1xf32>
    %68 = vector.broadcast %67 : vector<16x1xf32> to vector<16x32xf32>
    %69 = arith.subf %61, %68 : vector<16x32xf32>
    %70 = arith.mulf %69, %69 : vector<16x32xf32>
    %cst_30 = arith.constant dense<0.000000e+00> : vector<16xf32>
    %71 = vector.multi_reduction <add>, %70, %cst_30 [1] : vector<16x32xf32> to vector<16xf32>
    %72 = vector.shape_cast %71 : vector<16xf32> to vector<16x1xf32>
    %cst_31 = arith.constant 3.200000e+01 : f32
    %73 = vector.broadcast %cst_31 : f32 to vector<16x1xf32>
    %74 = arith.divf %72, %73 : vector<16x1xf32>
    %75 = vector.broadcast %67 : vector<16x1xf32> to vector<16x32xf32>
    %76 = arith.subf %61, %75 : vector<16x32xf32>
    %cst_32 = arith.constant 9.99999974E-6 : f32
    %77 = vector.broadcast %cst_32 : f32 to vector<16x1xf32>
    %78 = arith.addf %74, %77 : vector<16x1xf32>
    %79 = math.rsqrt %78 : vector<16x1xf32>
    %80 = vector.broadcast %79 : vector<16x1xf32> to vector<16x32xf32>
    %81 = arith.mulf %76, %80 : vector<16x32xf32>
    %82 = vector.broadcast %62 : vector<1x32xf32> to vector<16x32xf32>
    %83 = arith.mulf %81, %82 : vector<16x32xf32>
    %84 = vector.broadcast %63 : vector<1x32xf32> to vector<16x32xf32>
    %85 = arith.addf %83, %84 : vector<16x32xf32>
    %c0_33 = arith.constant 0 : index
    %c0_34 = arith.constant 0 : index
    %86 = vector.load %arg9[%c0_33, %c0_34] : memref<32x64xf32, #tpu.memory_space<vmem>>, vector<32x64xf32>
    %cst_35 = arith.constant dense<0.000000e+00> : vector<16x64xf32>
    %87 = tpu.matmul %85, %86, %cst_35 {dimension_numbers = #tpu.dot_dimension_numbers<[1], [0], [0], [1], [0, 0, 1, 1], [], []>} : vector<16x32xf32>, vector<32x64xf32>, vector<16x64xf32> -> vector<16x64xf32>
    %c0_36 = arith.constant 0 : index
    %c0_37 = arith.constant 0 : index
    %88 = vector.load %arg10[%c0_36, %c0_37] : memref<1x64xf32, #tpu.memory_space<vmem>>, vector<1x64xf32>
    %89 = vector.broadcast %88 : vector<1x64xf32> to vector<16x64xf32>
    %90 = arith.addf %87, %89 : vector<16x64xf32>
    %cst_38 = arith.constant 5.000000e-01 : f32
    %91 = vector.broadcast %cst_38 : f32 to vector<16x64xf32>
    %92 = arith.mulf %91, %90 : vector<16x64xf32>
    %cst_39 = arith.constant 0.707106769 : f32
    %93 = vector.broadcast %cst_39 : f32 to vector<16x64xf32>
    %94 = arith.mulf %90, %93 : vector<16x64xf32>
    %95 = math.erf %94 : vector<16x64xf32>
    %cst_40 = arith.constant 1.000000e+00 : f32
    %96 = vector.broadcast %cst_40 : f32 to vector<16x64xf32>
    %97 = arith.addf %96, %95 : vector<16x64xf32>
    %98 = arith.mulf %92, %97 : vector<16x64xf32>
    %c0_41 = arith.constant 0 : index
    %c0_42 = arith.constant 0 : index
    %99 = vector.load %arg11[%c0_41, %c0_42] : memref<64x32xf32, #tpu.memory_space<vmem>>, vector<64x32xf32>
    %cst_43 = arith.constant dense<0.000000e+00> : vector<16x32xf32>
    %100 = tpu.matmul %98, %99, %cst_43 {dimension_numbers = #tpu.dot_dimension_numbers<[1], [0], [0], [1], [0, 0, 1, 1], [], []>} : vector<16x64xf32>, vector<64x32xf32>, vector<16x32xf32> -> vector<16x32xf32>
    %c0_44 = arith.constant 0 : index
    %c0_45 = arith.constant 0 : index
    %101 = vector.load %arg12[%c0_44, %c0_45] : memref<1x32xf32, #tpu.memory_space<vmem>>, vector<1x32xf32>
    %102 = vector.broadcast %101 : vector<1x32xf32> to vector<16x32xf32>
    %103 = arith.addf %100, %102 : vector<16x32xf32>
    %104 = arith.addf %103, %61 : vector<16x32xf32>
    %cst_46 = arith.constant 0.707106769 : f32
    %105 = vector.broadcast %cst_46 : f32 to vector<16x32xf32>
    %106 = arith.mulf %104, %105 : vector<16x32xf32>
    %107 = vector.shape_cast %106 : vector<16x32xf32> to vector<2x8x32xf32>
    %c0_47 = arith.constant 0 : index
    %c0_48 = arith.constant 0 : index
    %c0_49 = arith.constant 0 : index
    %108 = vector.load %arg13[%c0_47, %c0_48, %c0_49] : memref<2x8x32xf32, #tpu.memory_space<vmem>>, vector<2x8x32xf32>
    tpu.vector_store %arg13[%c0_47, %c0_48, %c0_49], %107 {strides = array<i32>} : memref<2x8x32xf32, #tpu.memory_space<vmem>>, vector<2x8x32xf32>,
    return
  }
  func.func @transform_0(%arg0: i32) -> (i32, i32, i32) {
    %c0_i32 = arith.constant 0 : i32
    %c0_i32_0 = arith.constant 0 : i32
    %c0_i32_1 = arith.constant 0 : i32
    return %arg0, %c0_i32, %c0_i32_0 : i32, i32, i32
  }
  func.func @transform_1(%arg0: i32) -> (i32, i32) {
    %c0_i32 = arith.constant 0 : i32
    %c0_i32_0 = arith.constant 0 : i32
    return %arg0, %c0_i32 : i32, i32
  }
  func.func @transform_2(%arg0: i32) -> (i32, i32) {
    %c0_i32 = arith.constant 0 : i32
    %c0_i32_0 = arith.constant 0 : i32
    %c0_i32_1 = arith.constant 0 : i32
    return %c0_i32, %c0_i32_0 : i32, i32
  }
  func.func @transform_3(%arg0: i32) -> (i32, i32) {
    %c0_i32 = arith.constant 0 : i32
    %c0_i32_0 = arith.constant 0 : i32
    %c0_i32_1 = arith.constant 0 : i32
    return %c0_i32, %c0_i32_0 : i32, i32
  }
  func.func @transform_4(%arg0: i32) -> (i32, i32) {
    %c0_i32 = arith.constant 0 : i32
    %c0_i32_0 = arith.constant 0 : i32
    %c0_i32_1 = arith.constant 0 : i32
    return %c0_i32, %c0_i32_0 : i32, i32
  }
  func.func @transform_5(%arg0: i32) -> (i32, i32) {
    %c0_i32 = arith.constant 0 : i32
    %c0_i32_0 = arith.constant 0 : i32
    %c0_i32_1 = arith.constant 0 : i32
    return %c0_i32, %c0_i32_0 : i32, i32
  }
  func.func @transform_6(%arg0: i32) -> (i32, i32) {
    %c0_i32 = arith.constant 0 : i32
    %c0_i32_0 = arith.constant 0 : i32
    %c0_i32_1 = arith.constant 0 : i32
    return %c0_i32, %c0_i32_0 : i32, i32
  }
  func.func @transform_7(%arg0: i32) -> (i32, i32) {
    %c0_i32 = arith.constant 0 : i32
    %c0_i32_0 = arith.constant 0 : i32
    %c0_i32_1 = arith.constant 0 : i32
    return %c0_i32, %c0_i32_0 : i32, i32
  }
  func.func @transform_8(%arg0: i32) -> (i32, i32) {
    %c0_i32 = arith.constant 0 : i32
    %c0_i32_0 = arith.constant 0 : i32
    %c0_i32_1 = arith.constant 0 : i32
    return %c0_i32, %c0_i32_0 : i32, i32
  }
  func.func @transform_9(%arg0: i32) -> (i32, i32) {
    %c0_i32 = arith.constant 0 : i32
    %c0_i32_0 = arith.constant 0 : i32
    %c0_i32_1 = arith.constant 0 : i32
    return %c0_i32, %c0_i32_0 : i32, i32
  }
  func.func @transform_10(%arg0: i32) -> (i32, i32) {
    %c0_i32 = arith.constant 0 : i32
    %c0_i32_0 = arith.constant 0 : i32
    %c0_i32_1 = arith.constant 0 : i32
    return %c0_i32, %c0_i32_0 : i32, i32
  }
  func.func @transform_11(%arg0: i32) -> (i32, i32) {
    %c0_i32 = arith.constant 0 : i32
    %c0_i32_0 = arith.constant 0 : i32
    %c0_i32_1 = arith.constant 0 : i32
    return %c0_i32, %c0_i32_0 : i32, i32
  }
  func.func @transform_12(%arg0: i32) -> (i32, i32, i32) {
    %c0_i32 = arith.constant 0 : i32
    %c0_i32_0 = arith.constant 0 : i32
    %c0_i32_1 = arith.constant 0 : i32
    return %arg0, %c0_i32, %c0_i32_0 : i32, i32, i32
  }
}

</mosaic_0001>

<bundles_post_ra>
// kernel: tpu_custom_call.1
= control target key start
LH: loop header
LB: loop body
LE: loop exit
PB: predicated region body
PF: predicated region fallthrough
CT: control target
= control target key end

     0   :  { %17 = vsyncpa [#allocation3], 0  ;;  %s3073_s0 = inlined_call_operand.hbm [shape: f32[2,8,32], index: 0, kind: input, shape index: {}]   ;;  %s3074_s1 = inlined_call_operand.hbm [shape: f32[2,8], index: 1, kind: input, shape index: {}]   ;;  %s3075_s2 = inlined_call_operand.vmem [shape: f32[32,96], index: 2, kind: input, shape index: {}]   ;;  %s3076_s3 = inlined_call_operand.vmem [shape: f32[32,32], index: 3, kind: input, shape index: {}]   ;;  %s3077_s4 = inlined_call_operand.vmem [shape: f32[1,32], index: 4, kind: input, shape index: {}]   ;;  %s3078_s5 = inlined_call_operand.vmem [shape: f32[1,32], index: 5, kind: input, shape index: {}]   ;;  %s3079_s6 = inlined_call_operand.vmem [shape: f32[1,32], index: 6, kind: input, shape index: {}]   ;;  %s3080_s7 = inlined_call_operand.vmem [shape: f32[1,32], index: 7, kind: input, shape index: {}]   ;;  %s3081_s8 = inlined_call_operand.vmem [shape: f32[32,64], index: 8, kind: input, shape index: {}]   ;;  %s3082_s9 = inlined_call_operand.vmem [shape: f32[1,64], index: 9, kind: input, shape index: {}]   ;;  %s3083_s10 = inlined_call_operand.vmem [shape: f32[64,32], index: 10, kind: input, shape index: {}]   ;;  %s3084_s11 = inlined_call_operand.vmem [shape: f32[1,32], index: 11, kind: input, shape index: {}]   ;;  %s3085_s12 = inlined_call_operand.hbm [shape: f32[2,8,32], index: 12, kind: output, shape index: {}]  }
   0x1   :  { %18 = vsyncpa [#allocation6], 0 }
   0x2   :  { %19 = vsyncpa [#allocation4], 0  ;;  %s24_s23 = sshll.u32 %s3073_s0, 4  ;;  %s2249_s24 = smov [#allocation2]   ;;  %s25_s23 = int_to_ptr.hbm [resolvable:$true] %s24_s23 }
   0x3   :  { %s26_s25 = sshll.u32 %s2249_s24, 4  ;;  %s38_s28 = sshll.u32 %s3074_s1, 4  ;;  %s27_s25 = int_to_ptr.vmem [resolvable:$true] %s26_s25  ;;  %s39_s28 = int_to_ptr.hbm [resolvable:$true] %s38_s28 }
   0x4   :  { %s2250_s29 = smov 128   ;;  %s2251_s30 = smov 8  }
   0x5   :  { %32 = dma.hbm_to_vmem [thread:$0]  %s25_s23, 256, %s27_s25, [#allocation3], %s2250_s29, %s2250_s29, %s2251_s30  }
   0x6   :  { %s2252_s13 = smov [#allocation5]  }
   0x7   :  { %s40_s14 = sshll.u32 %s2252_s13, 4  ;;  %s41_s14 = int_to_ptr.vmem [resolvable:$true] %s40_s14 }
   0x8   :  { %43 = dma.hbm_to_vmem [thread:$0]  %s39_s28, 32, %s41_s14, [#allocation6]  }
   0x9   :  { %2243 = dma.done.wait [#allocation3], 256  }
   0xa   :  { %2244 = vsyncadd [#allocation3], 4294967040 }
   0xb   :  { %2245 = dma.done.wait [#allocation6], 32  }
   0xc   :  { %2246 = vsyncadd [#allocation6], 4294967264  ;;  %vm76_vm0 = vcmask 261120   ;;  %v72_v0 = vld [vmem:[#allocation2] sm:$0xff]  ;;  %v73_v2 = vld [vmem:[#allocation2 + $0x8] sm:$0xff]  ;;  %v2253_v4 = vmov 32.0  }
   0xd   :  { %v77_v1 = vsel %vm76_vm0, %v72_v0, 0.0  ;;  %v80_v3 = vsel %vm76_vm0, %v73_v2, 0.0  ;;  %2123 = vrcp.f32 %v2253_v4  ;;  %v141_v21 = vld [vmem:[%s3075_s2 + $0x18] sm:$0xff]  ;;  %v140_v22 = vld [vmem:[%s3075_s2 + $0x10] sm:$0xff]  ;;  %v139_v23 = vld [vmem:[%s3075_s2 + $0x8] sm:$0xff]  ;;  %s2256_s24 = smov 112  }
   0xe   :  { %78 = vadd.xlane.f32.xlu0 %v77_v1  ;;  %160 = vmatpush.msra.mxu0 %v141_v21  ;;  %v138_v24 = vld [vmem:[%s3075_s2] sm:$0xff]  ;;  %s2257_s25 = smov 104   ;;  %s2258_s26 = smov 96   ;;  %v2262_v57 = vmov 1983009808   ;;  %vm240_vm8 = vcmask 1047556  }
   0xf   :  { %v2117_v39 = vld [vmem:[%s3077_s4] ss:$0 sm:$0xff]  ;;  %s2254_s4 = smov 88   ;;  %s2259_s27 = smov 72   ;;  %v245_v58 = vunpack.c.l.s4 %v2262_v57  ;;  %vm931_vm9 = vcmask 64512  }
  0x10   :  { %161 = vmatpush.msra.mxu0 %v140_v22  ;;  %v2118_v43 = vld [vmem:[%s3078_s5] ss:$0 sm:$0xff]  ;;  %s2255_s5 = smov 120   ;;  %s2260_s28 = smov 80  }
  0x11   :  { %s2261_s13 = smov 64   ;;  %v2394_v61 = vunpack.c.0.s8 %v245_v58  ;;  %s2264_s14 = smov 40  }
  0x12   :  { %162 = vmatpush.msra.mxu0 %v139_v23  ;;  %s2265_s0 = smov 48   ;;  %s2266_s1 = smov 56  }
  0x13   :  { %v2124_v5 = vpop.eup %2123  ;;  %s2267_s15 = smov 16   ;;  %s2268_s16 = smov 24  }
  0x14   :  { %v84_v6 = vmul.f32 32.0, %v2124_v5  ;;  %vm88_vm1 = vweird.f32 %v2124_v5  ;;  %163 = vmatpush.msra.mxu0 %v138_v24 }
  0x16   :  { %81 = vadd.xlane.f32.xlu0 %v80_v3  ;;  %v85_v7 = vsub.f32 1.0, %v84_v6  ;;  %v2263_v6 = vmov 1934713408  }
  0x18   :  { %v86_v8 = vmul.f32 %v2124_v5, %v85_v7  ;;  %v293_v7 = vunpack.c.l.s4 %v2263_v6 }
  0x1a   :  { %v87_v9 = vadd.f32 %v2124_v5, %v86_v8 }
  0x1c   :  { %v2346_v10 = vsel %vm88_vm1, %v2124_v5, %v87_v9 }
  0x81   :  { %v79_v11 = vpop.xlane.xlu0 %78 }
  0x82   :  { %v90_v12 = vmul.f32 %v2346_v10, %v79_v11 }
  0x84   :  { %v92_v13 = vsub.f32 %v72_v0, %v90_v12 }
  0x86   :  { %v94_v14 = vmul.f32 %v92_v13, %v92_v13 }
  0x88   :  { %v96_v15 = vsel %vm76_vm0, %v94_v14, 0.0 }
  0x89   :  { %97 = vadd.xlane.f32.xlu1 %v96_v15  ;;  %v82_v16 = vpop.xlane.xlu0 %81 }
  0x8a   :  { %v91_v17 = vmul.f32 %v2346_v10, %v82_v16 }
  0x8c   :  { %v93_v18 = vsub.f32 %v73_v2, %v91_v17 }
  0x8e   :  { %v95_v19 = vmul.f32 %v93_v18, %v93_v18 }
  0x90   :  { %v99_v20 = vsel %vm76_vm0, %v95_v19, 0.0  ;;  %v2407_v19 = vunpack.c.0.s8 %v293_v7 }
  0x91   :  { %100 = vadd.xlane.f32.xlu1 %v99_v20 }
  0xfc   :  { %v98_v25 = vpop.xlane.xlu1 %97 }
  0xfd   :  { %v102_v26 = vmul.f32 %v98_v25, %v2346_v10 }
  0xff   :  { %v104_v27 = vadd.f32 1e-05, %v102_v26 }
 0x101   :  { %2125 = vrsqrt.f32 %v104_v27  ;;  %vm112_vm3 = vweird.f32 %v104_v27 }
 0x104   :  { %v101_v28 = vpop.xlane.xlu1 %100 }
 0x105   :  { %v103_v29 = vmul.f32 %v101_v28, %v2346_v10 }
 0x107   :  { %v2126_v30 = vpop.eup %2125  ;;  %v105_v31 = vadd.f32 1e-05, %v103_v29 }
 0x108   :  { %v107_v32 = vmul.f32 %v2126_v30, %v104_v27  ;;  %vm113_vm2 = vweird.f32 %v2126_v30 }
 0x109   :  { %2127 = vrsqrt.f32 %v105_v31  ;;  %vm114_vm4 = vmor %vm112_vm3, %vm113_vm2  ;;  %vm122_vm6 = vweird.f32 %v105_v31 }
 0x10a   :  { %v108_v33 = vmul.f32 %v2126_v30, %v107_v32 }
 0x10c   :  { %v109_v34 = vmul.f32 0.5, %v108_v33 }
 0x10e   :  { %v110_v35 = vsub.f32 1.5, %v109_v34 }
 0x10f   :  { %v2128_v36 = vpop.eup %2127 }
 0x110   :  { %v111_v37 = vmul.f32 %v2126_v30, %v110_v35  ;;  %v117_v38 = vmul.f32 %v2128_v36, %v105_v31  ;;  %vm123_vm5 = vweird.f32 %v2128_v36 }
 0x111   :  { %vm124_vm7 = vmor %vm122_vm6, %vm123_vm5 }
 0x112   :  { %v115_v40 = vsel %vm114_vm4, %v2126_v30, %v111_v37  ;;  %v118_v41 = vmul.f32 %v2128_v36, %v117_v38 }
 0x113   :  { %v126_v42 = vmul.f32 %v115_v40, %v92_v13 }
 0x114   :  { %v119_v44 = vmul.f32 0.5, %v118_v41 }
 0x115   :  { %v131_v45 = vmul.f32 %v2117_v39, %v126_v42 }
 0x116   :  { %v120_v46 = vsub.f32 1.5, %v119_v44 }
 0x117   :  { %v136_v47 = vadd.f32 %v2118_v43, %v131_v45 }
 0x118   :  { %v121_v48 = vmul.f32 %v2128_v36, %v120_v46 }
 0x119   :  { %2060 = vmatmul.msk.f32.vlgmr.msra.gmra.mxu0 %vm76_vm0, %v136_v47 }
 0x11a   :  { %v125_v49 = vsel %vm124_vm7, %v2128_v36, %v121_v48 }
 0x11b   :  { %v127_v50 = vmul.f32 %v125_v49, %v93_v18 }
 0x11d   :  { %v132_v51 = vmul.f32 %v2117_v39, %v127_v50 }
 0x11f   :  { %v137_v52 = vadd.f32 %v2118_v43, %v132_v51 }
 0x121   :  { %2061 = vmatmul.msk.f32.gmra.mxu0 %vm76_vm0, %v137_v52 }
 0x196   :  { %v2374_v53 = vpop.f32.mrf.mxu0 }
 0x197   :  { %197 = vrot.lane.b32.xlu0 %v2374_v53, %s2254_s4  ;;  %173 = vrot.lane.b32.xlu2 %v2374_v53, %s2255_s5  ;;  %v242_v2 = vrot.slane %v2374_v53, 4 }
 0x198   :  { %179 = vrot.lane.b32.xlu1 %v2374_v53, %s2256_s24 }
 0x19e   :  { %v2379_v54 = vpop.f32.mrf.mxu0 }
 0x19f   :  { %185 = vrot.lane.b32.xlu2 %v2374_v53, %s2257_s25  ;;  %175 = vrot.lane.b32.xlu0 %v2379_v54, %s2255_s5 }
 0x1a0   :  { %199 = vrot.lane.b32.xlu1 %v2379_v54, %s2254_s4 }
 0x1a7   :  { %191 = vrot.lane.b32.xlu2 %v2374_v53, %s2258_s26  ;;  %181 = vrot.lane.b32.xlu0 %v2379_v54, %s2256_s24 }
 0x1a8   :  { %211 = vrot.lane.b32.xlu1 %v2379_v54, %s2259_s27 }
 0x1af   :  { %209 = vrot.lane.b32.xlu2 %v2374_v53, %s2259_s27  ;;  %205 = vrot.lane.b32.xlu0 %v2379_v54, %s2260_s28 }
 0x1b7   :  { %203 = vrot.lane.b32.xlu2 %v2374_v53, %s2260_s28  ;;  %215 = vrot.lane.b32.xlu0 %v2374_v53, %s2261_s13 }
 0x1bf   :  { %187 = vrot.lane.b32.xlu2 %v2379_v54, %s2257_s25 }
 0x1c7   :  { %193 = vrot.lane.b32.xlu2 %v2379_v54, %s2258_s26  ;;  %s2269_s26 = smov [#allocation7]  }
 0x1c8   :  { %s2044_s27 = sshll.u32 %s2269_s26, 4  ;;  %s2045_s27 = int_to_ptr.vmem [resolvable:$true] %s2044_s27 }
 0x1f1   :  { %v174_v55 = vpop.permute.xlu2 %173 }
 0x1f2   :  { %v254_v60 = vrot.slane %v174_v55, 4 }
 0x1f9   :  { %v186_v56 = vpop.permute.xlu2 %185 }
 0x1fa   :  { %v252_v62 = vrot.slane %v186_v56, 4  ;;  %v255_v63 = vsel %vm240_vm8, %v186_v56, %v254_v60 }
 0x1fb   :  { %v263_v0 = vperm.slane %v255_v63, %v2394_v61 }
 0x1fc   :  { %v253_v4 = vsel %vm240_vm8, %v252_v62, %v174_v55  ;;  %v410_v62 = vrot.slane %v2379_v54, 4 }
 0x1fd   :  { %v259_v15 = vperm.slane %v253_v4, %v2394_v61  ;;  %v300_v16 = vrot.slane %v263_v0, 4 }
 0x1ff   :  { %v288_v27 = vrot.slane %v259_v15, 4 }
 0x201   :  { %v192_v59 = vpop.permute.xlu2 %191 }
 0x202   :  { %v266_v24 = vrot.slane %v192_v59, 4 }
 0x209   :  { %v210_v1 = vpop.permute.xlu2 %209  ;;  %v198_v3 = vpop.permute.xlu0 %197 }
 0x20a   :  { %v276_v5 = vrot.slane %v210_v1, 4  ;;  %v180_v8 = vpop.permute.xlu1 %179  ;;  %v278_v9 = vrot.slane %v198_v3, 4 }
 0x20b   :  { %v239_v11 = vrot.slane %v180_v8, 4  ;;  %v243_v12 = vsel %vm240_vm8, %v180_v8, %v242_v2 }
 0x20c   :  { %v251_v13 = vperm.slane %v243_v12, %v2394_v61  ;;  %v279_v14 = vsel %vm240_vm8, %v210_v1, %v278_v9  ;;  %v277_v18 = vsel %vm240_vm8, %v276_v5, %v198_v3 }
 0x20d   :  { %v241_v17 = vsel %vm240_vm8, %v239_v11, %v2374_v53  ;;  %v287_v23 = vperm.slane %v279_v14, %v2394_v61  ;;  %v283_v26 = vperm.slane %v277_v18, %v2394_v61 }
 0x20e   :  { %v247_v20 = vperm.slane %v241_v17, %v2394_v61  ;;  %v302_v21 = vrot.slane %v251_v13, 4  ;;  %v301_v22 = vsel %vm240_vm8, %v300_v16, %v251_v13 }
 0x20f   :  { %v307_v31 = vperm.slane %v301_v22, %v2407_v19  ;;  %v324_v37 = vrot.slane %v287_v23, 4  ;;  %v312_v39 = vrot.slane %v283_v26, 4 }
 0x210   :  { %v290_v25 = vrot.slane %v247_v20, 4  ;;  %v303_v30 = vsel %vm240_vm8, %v263_v0, %v302_v21  ;;  %v289_v35 = vsel %vm240_vm8, %v288_v27, %v247_v20 }
 0x211   :  { %v204_v28 = vpop.permute.xlu2 %203  ;;  %v176_v29 = vpop.permute.xlu0 %175  ;;  %v2421_v41 = vperm.slane %v303_v30, %v2407_v19  ;;  %v295_v45 = vperm.slane %v289_v35, %v2407_v19  ;;  %v346_v47 = vrot.slane %v307_v31, 4 }
 0x212   :  { %v264_v32 = vrot.slane %v204_v28, 4  ;;  %v267_v33 = vsel %vm240_vm8, %v204_v28, %v266_v24  ;;  %v200_v34 = vpop.permute.xlu1 %199  ;;  %v291_v36 = vsel %vm240_vm8, %v259_v15, %v290_v25 }
 0x213   :  { %v275_v38 = vperm.slane %v267_v33, %v2394_v61  ;;  %v2427_v46 = vperm.slane %v291_v36, %v2407_v19  ;;  %v350_v57 = vrot.slane %v2421_v41, 4  ;;  %v338_v0 = vrot.slane %v295_v45, 4 }
 0x214   :  { %v265_v40 = vsel %vm240_vm8, %v264_v32, %v192_v59  ;;  %v422_v59 = vrot.slane %v176_v29, 4  ;;  %v446_v3 = vrot.slane %v200_v34, 4 }
 0x215   :  { %v271_v42 = vperm.slane %v265_v40, %v2394_v61  ;;  %v325_v43 = vsel %vm240_vm8, %v324_v37, %v275_v38  ;;  %v326_v44 = vrot.slane %v275_v38, 4  ;;  %v342_v1 = vrot.slane %v2427_v46, 4 }
 0x216   :  { %v331_v48 = vperm.slane %v325_v43, %v2407_v19 }
 0x217   :  { %v313_v49 = vsel %vm240_vm8, %v312_v39, %v271_v42  ;;  %v314_v50 = vrot.slane %v271_v42, 4  ;;  %v327_v51 = vsel %vm240_vm8, %v287_v23, %v326_v44 }
 0x218   :  { %v319_v52 = vperm.slane %v313_v49, %v2407_v19  ;;  %v335_v55 = vperm.slane %v327_v51, %v2407_v19  ;;  %v2435_v56 = vsel %vm240_vm8, %v331_v48, %v346_v47  ;;  %v344_v2 = vrot.slane %v331_v48, 4 }
 0x219   :  { %v315_v58 = vsel %vm240_vm8, %v283_v26, %v314_v50  ;;  %v188_v60 = vpop.permute.xlu2 %187  ;;  %v182_v63 = vpop.permute.xlu0 %181  ;;  %v614_v7 = vrot.slane %v2435_v56, 4 }
 0x21a   :  { %v212_v4 = vpop.permute.xlu1 %211  ;;  %v323_v5 = vperm.slane %v315_v58, %v2407_v19  ;;  %v2443_v6 = vsel %vm240_vm8, %v335_v55, %v350_v57  ;;  %v420_v8 = vrot.slane %v188_v60, 4  ;;  %v336_v9 = vrot.slane %v319_v52, 4 }
 0x21b   :  { %v2447_v11 = vsel %vm240_vm8, %v319_v52, %v338_v0  ;;  %v423_v12 = vsel %vm240_vm8, %v188_v60, %v422_v59  ;;  %v444_v13 = vrot.slane %v212_v4, 4  ;;  %v612_v14 = vrot.slane %v2443_v6, 4 }
 0x21c   :  { %v421_v15 = vsel %vm240_vm8, %v420_v8, %v176_v29  ;;  %v431_v16 = vperm.slane %v423_v12, %v2394_v61  ;;  %v408_v17 = vrot.slane %v182_v63, 4  ;;  %v2454_v18 = vsel %vm240_vm8, %v344_v2, %v307_v31 }
 0x21d   :  { %v427_v20 = vperm.slane %v421_v15, %v2394_v61  ;;  %v445_v21 = vsel %vm240_vm8, %v444_v13, %v200_v34  ;;  %v447_v22 = vsel %vm240_vm8, %v212_v4, %v446_v3  ;;  %v340_v23 = vrot.slane %v323_v5, 4 }
 0x21e   :  { %v468_v24 = vrot.slane %v431_v16, 4  ;;  %v409_v25 = vsel %vm240_vm8, %v408_v17, %v2379_v54  ;;  %v411_v26 = vsel %vm240_vm8, %v182_v63, %v410_v62  ;;  %v348_v27 = vrot.slane %v335_v55, 4 }
 0x21f   :  { %v456_v28 = vrot.slane %v427_v20, 4  ;;  %v415_v29 = vperm.slane %v409_v25, %v2394_v61  ;;  %v419_v30 = vperm.slane %v411_v26, %v2394_v61  ;;  %v602_v31 = vrot.slane %v2454_v18, 4 }
 0x220   :  { %v2467_v32 = vsel %vm240_vm8, %v612_v14, %v2435_v56  ;;  %v451_v33 = vperm.slane %v445_v21, %v2394_v61  ;;  %v455_v34 = vperm.slane %v447_v22, %v2394_v61  ;;  %v337_v44 = vsel %vm240_vm8, %v336_v9, %v295_v45 }
 0x221   :  { %v194_v35 = vpop.permute.xlu2 %193  ;;  %v206_v36 = vpop.permute.xlu0 %205  ;;  %v457_v37 = vsel %vm240_vm8, %v456_v28, %v415_v29  ;;  %v458_v38 = vrot.slane %v415_v29, 4  ;;  %v469_v39 = vsel %vm240_vm8, %v468_v24, %v419_v30  ;;  %v470_v40 = vrot.slane %v419_v30, 4 }
 0x222   :  { %v434_v42 = vrot.slane %v194_v35, 4  ;;  %v432_v43 = vrot.slane %v206_v36, 4  ;;  %v341_v47 = vsel %vm240_vm8, %v340_v23, %v2427_v46  ;;  %v2478_v49 = vperm.slane %v457_v37, %v2407_v19 }
 0x223   :  { %v459_v48 = vsel %vm240_vm8, %v427_v20, %v458_v38  ;;  %v471_v50 = vsel %vm240_vm8, %v431_v16, %v470_v40  ;;  %v475_v51 = vperm.slane %v469_v39, %v2407_v19  ;;  %v480_v52 = vrot.slane %v451_v33, 4 }
 0x224   :  { %v492_v55 = vrot.slane %v455_v34, 4  ;;  %v343_v57 = vsel %vm240_vm8, %v323_v5, %v342_v1  ;;  %v349_v58 = vsel %vm240_vm8, %v348_v27, %v2421_v41  ;;  %v433_v45 = vsel %vm240_vm8, %v432_v43, %v194_v35 }
 0x225   :  { %v435_v46 = vsel %vm240_vm8, %v206_v36, %v434_v42  ;;  %v576_v59 = vrot.slane %v341_v47, 4  ;;  %v578_v60 = vrot.slane %v337_v44, 4  ;;  %v2488_v62 = vperm.slane %v459_v48, %v2407_v19 }
 0x226   :  { %v479_v63 = vperm.slane %v471_v50, %v2407_v19  ;;  %v439_v0 = vperm.slane %v433_v45, %v2394_v61  ;;  %v443_v2 = vperm.slane %v435_v46, %v2394_v61  ;;  %v506_v1 = vrot.slane %v2478_v49, 4 }
 0x227   :  { %v514_v3 = vrot.slane %v475_v51, 4  ;;  %v579_v41 = vsel %vm240_vm8, %v341_v47, %v578_v60  ;;  %v590_v4 = vrot.slane %v2447_v11, 4  ;;  %v588_v15 = vrot.slane %v343_v57, 4 }
 0x228   :  { %v481_v5 = vsel %vm240_vm8, %v480_v52, %v439_v0  ;;  %v482_v8 = vrot.slane %v439_v0, 4  ;;  %v493_v9 = vsel %vm240_vm8, %v492_v55, %v443_v2  ;;  %v494_v12 = vrot.slane %v443_v2, 4 }
 0x229   :  { %v487_v13 = vperm.slane %v481_v5, %v2407_v19  ;;  %v499_v14 = vperm.slane %v493_v9, %v2407_v19  ;;  %v591_v16 = vsel %vm240_vm8, %v343_v57, %v590_v4  ;;  %v518_v17 = vrot.slane %v479_v63, 4 }
 0x22a   :  { %v483_v20 = vsel %vm240_vm8, %v451_v33, %v482_v8  ;;  %v495_v21 = vsel %vm240_vm8, %v455_v34, %v494_v12  ;;  %v2504_v22 = vperm.slane %v591_v16, %v2394_v61  ;;  %v2509_v25 = vperm.slane %v579_v41, %v2394_v61 }
 0x22b   :  { %v491_v23 = vperm.slane %v483_v20, %v2407_v19  ;;  %v503_v24 = vperm.slane %v495_v21, %v2407_v19  ;;  %v603_v26 = vsel %vm240_vm8, %v349_v58, %v602_v31  ;;  %v2513_v27 = vsel %vm240_vm8, %v487_v13, %v506_v1 }
 0x22c   :  { %v512_v28 = vrot.slane %v499_v14, 4  ;;  %v515_v29 = vsel %vm240_vm8, %v499_v14, %v514_v3  ;;  %v615_v30 = vsel %vm240_vm8, %v2443_v6, %v614_v7  ;;  %v510_v33 = vrot.slane %v2488_v62, 4 }
 0x22d   :  { %v516_v34 = vrot.slane %v503_v24, 4  ;;  %v519_v35 = vsel %vm240_vm8, %v503_v24, %v518_v17  ;;  %v600_v36 = vrot.slane %v349_v58, 4  ;;  %v611_v37 = vperm.slane %v603_v26, %v2394_v61 }
 0x22e   :  { %v2523_v31 = vsel %vm240_vm8, %v512_v28, %v475_v51  ;;  %v623_v38 = vperm.slane %v615_v30, %v2394_v61  ;;  %v636_v39 = vrot.slane %v2504_v22, 4  ;;  %v504_v56 = vrot.slane %v487_v13, 4 }
 0x22f   :  { %v508_v40 = vrot.slane %v491_v23, 4  ;;  %v702_v6 = vrot.slane %v2513_v27, 4  ;;  %v726_v7 = vrot.slane %v515_v29, 4  ;;  %v2530_v42 = vsel %vm240_vm8, %v516_v34, %v479_v63 }
 0x230   :  { %v724_v43 = vrot.slane %v519_v35, 4  ;;  %v637_v47 = vsel %vm240_vm8, %v636_v39, %v2509_v25  ;;  %v660_v48 = vrot.slane %v623_v38, 4  ;;  %v714_v50 = vrot.slane %v2523_v31, 4 }
 0x231   :  { %v643_v51 = vperm.slane %v637_v47, %v2407_v19  ;;  %v577_v52 = vsel %vm240_vm8, %v576_v59, %v337_v44  ;;  %v589_v55 = vsel %vm240_vm8, %v588_v15, %v2447_v11  ;;  %v601_v46 = vsel %vm240_vm8, %v600_v36, %v2454_v18 }
 0x232   :  { %v661_v57 = vsel %vm240_vm8, %v660_v48, %v611_v37  ;;  %v2541_v58 = vperm.slane %v577_v52, %v2394_v61  ;;  %v2544_v45 = vperm.slane %v589_v55, %v2394_v61  ;;  %v2550_v0 = vperm.slane %v601_v46, %v2394_v61 }
 0x233   :  { %v667_v60 = vperm.slane %v661_v57, %v2407_v19  ;;  %v682_v63 = vrot.slane %v643_v51, 4  ;;  %v2554_v11 = vperm.slane %v2467_v32, %v2394_v61  ;;  %v638_v44 = vrot.slane %v2509_v25, 4 }
 0x234   :  { %v662_v59 = vrot.slane %v611_v37, 4  ;;  %v624_v2 = vrot.slane %v2544_v45, 4  ;;  %v505_v1 = vsel %vm240_vm8, %v504_v56, %v2478_v49  ;;  %v712_v18 = vrot.slane %v2530_v42, 4 }
 0x235   :  { %v680_v3 = vrot.slane %v667_v60, 4  ;;  %v683_v41 = vsel %vm240_vm8, %v667_v60, %v682_v63  ;;  %v648_v4 = vrot.slane %v2554_v11, 4  ;;  %v509_v5 = vsel %vm240_vm8, %v508_v40, %v2488_v62 }
 0x236   :  { %2066 = vmatpush.xpose.msk.msra.mxu3 %vm931_vm9, %v683_v41  ;;  %v625_v32 = vsel %vm240_vm8, %v624_v2, %v2541_v58  ;;  %v511_v8 = vsel %vm240_vm8, %v491_v23, %v510_v33  ;;  %v690_v9 = vrot.slane %v505_v1, 4  ;;  %v725_v49 = vsel %vm240_vm8, %v724_v43, %v515_v29 }
 0x237   :  { %v681_v12 = vsel %vm240_vm8, %v680_v3, %v643_v51  ;;  %v631_v13 = vperm.slane %v625_v32, %v2407_v19  ;;  %v649_v14 = vsel %vm240_vm8, %v648_v4, %v2550_v0  ;;  %v688_v16 = vrot.slane %v509_v5, 4 }
 0x238   :  { %2062 = vmatpush.xpose.msk.msra.mxu2 %vm931_vm9, %v681_v12  ;;  %v655_v15 = vperm.slane %v649_v14, %v2407_v19  ;;  %v691_v17 = vsel %vm240_vm8, %v509_v5, %v690_v9  ;;  %v703_v62 = vsel %vm240_vm8, %v511_v8, %v702_v6  ;;  %v715_v24 = vsel %vm240_vm8, %v2530_v42, %v714_v50 }
 0x239   :  { %v674_v20 = vrot.slane %v631_v13, 4  ;;  %v699_v21 = vperm.slane %v691_v17, %v2394_v61  ;;  %v711_v23 = vperm.slane %v703_v62, %v2394_v61  ;;  %v723_v26 = vperm.slane %v715_v24, %v2394_v61 }
 0x23a   :  { %v672_v25 = vrot.slane %v655_v15, 4  ;;  %v727_v28 = vsel %vm240_vm8, %v519_v35, %v726_v7  ;;  %v639_v29 = vsel %vm240_vm8, %v2504_v22, %v638_v44  ;;  %v663_v39 = vsel %vm240_vm8, %v623_v38, %v662_v59 }
 0x23b   :  { %v675_v30 = vsel %vm240_vm8, %v655_v15, %v674_v20  ;;  %v735_v33 = vperm.slane %v727_v28, %v2394_v61  ;;  %v748_v34 = vrot.slane %v711_v23, 4  ;;  %v647_v36 = vperm.slane %v639_v29, %v2407_v19 }
 0x23c   :  { %v673_v37 = vsel %vm240_vm8, %v672_v25, %v631_v13  ;;  %2067 = vmatmul.msk.f32.vlgmr.msra.gmra.mxu3 %vm931_vm9, %v675_v30  ;;  %v750_v56 = vrot.slane %v699_v21, 4  ;;  %v774_v40 = vrot.slane %v723_v26, 4  ;;  %v700_v35 = vrot.slane %v511_v8, 4 }
 0x23d   :  { %2063 = vmatmul.msk.f32.vlgmr.msra.gmra.mxu2 %vm931_vm9, %v673_v37  ;;  %v749_v22 = vsel %vm240_vm8, %v748_v34, %v699_v21  ;;  %v772_v6 = vrot.slane %v735_v33, 4  ;;  %v671_v7 = vperm.slane %v663_v39, %v2407_v19  ;;  %v689_v48 = vsel %vm240_vm8, %v688_v16, %v505_v1 }
 0x23e   :  { %v755_v42 = vperm.slane %v749_v22, %v2407_v19  ;;  %v751_v43 = vsel %vm240_vm8, %v711_v23, %v750_v56  ;;  %v775_v47 = vsel %vm240_vm8, %v735_v33, %v774_v40  ;;  %v731_v38 = vperm.slane %v725_v49, %v2394_v61 }
 0x23f   :  { %v650_v50 = vrot.slane %v2550_v0, 4  ;;  %v773_v51 = vsel %vm240_vm8, %v772_v6, %v723_v26  ;;  %v686_v52 = vrot.slane %v647_v36, 4  ;;  %v783_v46 = vperm.slane %v775_v47, %v2407_v19 }
 0x240   :  { %v779_v55 = vperm.slane %v773_v51, %v2407_v19  ;;  %v794_v57 = vrot.slane %v755_v42, 4  ;;  %v695_v60 = vperm.slane %v689_v48, %v2394_v61  ;;  %v684_v63 = vrot.slane %v671_v7, 4 }
 0x241   :  { %v759_v44 = vperm.slane %v751_v43, %v2407_v19  ;;  %v701_v59 = vsel %vm240_vm8, %v700_v35, %v2513_v27  ;;  %v713_v2 = vsel %vm240_vm8, %v712_v18, %v2523_v31  ;;  %v796_v3 = vrot.slane %v783_v46, 4 }
 0x242   :  { %v792_v0 = vrot.slane %v779_v55, 4  ;;  %v795_v1 = vsel %vm240_vm8, %v779_v55, %v794_v57  ;;  %v707_v41 = vperm.slane %v701_v59, %v2394_v61  ;;  %v687_v4 = vsel %vm240_vm8, %v671_v7, %v686_v52 }
 0x243   :  { %2068 = vmatpush.xpose.msk.msra.mxu1 %vm931_vm9, %v795_v1  ;;  %v719_v32 = vperm.slane %v713_v2, %v2394_v61  ;;  %v760_v5 = vrot.slane %v731_v38, 4  ;;  %v738_v8 = vrot.slane %v695_v60, 4  ;;  %v626_v9 = vrot.slane %v2541_v58, 4 }
 0x244   :  { %v793_v27 = vsel %vm240_vm8, %v792_v0, %v755_v42  ;;  %v797_v31 = vsel %vm240_vm8, %v796_v3, %v759_v44  ;;  %v736_v18 = vrot.slane %v707_v41, 4  ;;  %v685_v49 = vsel %vm240_vm8, %v684_v63, %v647_v36 }
 0x245   :  { %2064 = vmatpush.xpose.msk.msrb.mxu2 %vm931_vm9, %v793_v27  ;;  %2072 = vmatpush.xpose.msk.msrb.mxu3 %vm931_vm9, %v797_v31  ;;  %v761_v12 = vsel %vm240_vm8, %v760_v5, %v719_v32  ;;  %v762_v13 = vrot.slane %v719_v32, 4  ;;  %v798_v14 = vrot.slane %v759_v44, 4  ;;  %v739_v17 = vsel %vm240_vm8, %v707_v41, %v738_v8 }
 0x246   :  { %v737_v58 = vsel %vm240_vm8, %v736_v18, %v695_v60  ;;  %v767_v15 = vperm.slane %v761_v12, %v2407_v19  ;;  %v651_v20 = vsel %vm240_vm8, %v2554_v11, %v650_v50  ;;  %v627_v24 = vsel %vm240_vm8, %v2544_v45, %v626_v9 }
 0x247   :  { %2074 = vmatpush.xpose.msk.msrb.mxu1 %vm931_vm9, %v687_v4  ;;  %v743_v16 = vperm.slane %v737_v58, %v2407_v19  ;;  %v763_v62 = vsel %vm240_vm8, %v731_v38, %v762_v13  ;;  %v747_v28 = vperm.slane %v739_v17, %v2407_v19  ;;  %v659_v30 = vperm.slane %v651_v20, %v2407_v19  ;;  %v908_v20 = vld [vmem:[#allocation5] sm:$0x3] }
 0x248   :  { %v784_v21 = vrot.slane %v767_v15, 4  ;;  %v771_v23 = vperm.slane %v763_v62, %v2407_v19  ;;  %v799_v11 = vsel %vm240_vm8, %v783_v46, %v798_v14  ;;  %v635_v34 = vperm.slane %v627_v24, %v2407_v19 }
 0x249   :  { %2070 = vmatpush.xpose.msk.msra.mxu2 %vm931_vm9, %v685_v49  ;;  %v786_v25 = vrot.slane %v743_v16, 4  ;;  %v676_v36 = vrot.slane %v659_v30, 4  ;;  %v790_v40 = vrot.slane %v747_v28, 4  ;;  %v910_v44 = vlaneseq }
 0x24a   :  { %v785_v26 = vsel %vm240_vm8, %v784_v21, %v743_v16  ;;  %v788_v29 = vrot.slane %v771_v23, 4  ;;  %v678_v37 = vrot.slane %v635_v34, 4 }
 0x24b   :  { %2065 = vmatmul.msk.f32.vlgmr.msrb.gmra.mxu2 %vm931_vm9, %v785_v26  ;;  %v787_v33 = vsel %vm240_vm8, %v767_v15, %v786_v25  ;;  %v677_v39 = vsel %vm240_vm8, %v676_v36, %v635_v34  ;;  %v791_v35 = vsel %vm240_vm8, %v771_v23, %v790_v40  ;;  %v911_v59 = vshrl.u32 %v910_v44, 7 }
 0x24c   :  { %2069 = vmatmul.msk.f32.vlgmr.msra.gmra.mxu1 %vm931_vm9, %v787_v33  ;;  %v789_v45 = vsel %vm240_vm8, %v788_v29, %v747_v28  ;;  %v679_v56 = vsel %vm240_vm8, %v659_v30, %v678_v37  ;;  %v909_v26 = vperm.slane %v908_v20, 0 }
 0x24d   :  { %2076 = vmatpush.xpose.msk.msrb.mxu2 %vm931_vm9, %v799_v11  ;;  %2073 = vmatmul.msk.f32.vlgmr.msrb.gmra.mxu3 %vm931_vm9, %v789_v45 }
 0x24e   :  { %2115 = vset.pattern.permute.xlu0 %v911_v59  ;;  %2116 = vset.pattern.permute.xlu1 %v911_v59 }
 0x253   :  { %2071 = vmatmul.msk.f32.vlgmr.msra.gmra.mxu2 %vm931_vm9, %v677_v39 }
 0x254   :  { %2075 = vmatmul.msk.f32.vlgmr.msrb.gmra.mxu1 %vm931_vm9, %v679_v56 }
 0x25b   :  { %2077 = vmatmul.msk.f32.vlgmr.msrb.gmra.mxu2 %vm931_vm9, %v791_v35 }
 0x2bf   :  { %v1007_v22 = vpop.f32.mrf.mxu3 }
 0x2c0   :  { %v955_v6 = vpop.f32.mrf.mxu2  ;;  %v1146_v7 = vsel %vm931_vm9, %v1007_v22, -inf }
 0x2c1   :  { %v1140_v42 = vsel %vm931_vm9, %v955_v6, -inf  ;;  %1147 = vmax.xlane.f32.xlu1 %v1146_v7 }
 0x2c2   :  { %1141 = vmax.xlane.f32.xlu2 %v1140_v42 }
 0x2c9   :  { %v1033_v43 = vpop.f32.mrf.mxu1 }
 0x2ca   :  { %v1149_v47 = vsel %vm931_vm9, %v1033_v43, -inf }
 0x2cb   :  { %1150 = vmax.xlane.f32.xlu2 %v1149_v47 }
 0x2ce   :  { %v981_v48 = vpop.f32.mrf.mxu2 }
 0x2cf   :  { %v1143_v38 = vsel %vm931_vm9, %v981_v48, -inf }
 0x2d0   :  { %1144 = vmax.xlane.f32.xlu1 %v1143_v38  ;;  %v2656_v52 = vpop.f32.mrf.mxu3 }
 0x2d1   :  { %v1111_v50 = vpop.f32.mrf.mxu1  ;;  %v1155_v57 = vsel %vm931_vm9, %v2656_v52, -inf }
 0x2d2   :  { %v1158_v51 = vsel %vm931_vm9, %v1111_v50, -inf }
 0x2d3   :  { %1159 = vmax.xlane.f32.xlu0 %v1158_v51 }
 0x2d6   :  { %v1059_v55 = vpop.f32.mrf.mxu2 }
 0x2d7   :  { %v1152_v46 = vsel %vm931_vm9, %v1059_v55, -inf }
 0x2d8   :  { %1156 = vmax.xlane.f32.xlu1 %v1155_v57 }
 0x2db   :  { %1153 = vmax.xlane.f32.xlu0 %v1152_v46 }
 0x2de   :  { %v1137_v60 = vpop.f32.mrf.mxu2 }
 0x2df   :  { %v1161_v63 = vsel %vm931_vm9, %v1137_v60, -inf }
 0x2e0   :  { %1162 = vmax.xlane.f32.xlu2 %v1161_v63 }
 0x2ef   :  { %233 = vrot.lane.b32.xlu0 %v2374_v53, %s2264_s14 }
 0x2f1   :  { %227 = vrot.lane.b32.xlu1 %v2374_v53, %s2265_s0 }
 0x2f7   :  { %229 = vrot.lane.b32.xlu0 %v2379_v54, %s2265_s0 }
 0x2f8   :  { %221 = vrot.lane.b32.xlu2 %v2374_v53, %s2266_s1  ;;  %v216_v53 = vpop.permute.xlu0 %215 }
 0x2f9   :  { %217 = vrot.lane.b32.xlu1 %v2379_v54, %s2261_s13  ;;  %v354_v42 = vrot.slane %v216_v53, 4 }
 0x2ff   :  { %235 = vrot.lane.b32.xlu0 %v2379_v54, %s2264_s14  ;;  %s2046_s14 = sshll.u32 %s3085_s12, 4  ;;  %s2047_s14 = int_to_ptr.hbm [resolvable:$true] %s2046_s14 }
 0x301   :  { %223 = vrot.lane.b32.xlu1 %v2379_v54, %s2266_s1 }
 0x334   :  { %v1148_v2 = vpop.xlane.xlu1 %1147 }
 0x335   :  { %v1142_v0 = vpop.xlane.xlu2 %1141  ;;  %v1166_v1 = vsub.f32 %v1007_v22, %v1148_v2  ;;  %v916_v22 = vperm.slane %v908_v20, 1 }
 0x336   :  { %v1164_v3 = vsub.f32 %v955_v6, %v1142_v0 }
 0x337   :  { %v1176_v41 = vmul.f32 1.442695, %v1166_v1 }
 0x338   :  { %v1172_v4 = vmul.f32 1.442695, %v1164_v3 }
 0x339   :  { %2129 = vpow2.f32 %v1176_v41 }
 0x33a   :  { %2131 = vpow2.f32 %v1172_v4 }
 0x33e   :  { %v1151_v32 = vpop.xlane.xlu2 %1150 }
 0x33f   :  { %v2670_v5 = vpop.eup %2129  ;;  %v1167_v8 = vsub.f32 %v1033_v43, %v1151_v32 }
 0x340   :  { %v2672_v9 = vpop.eup %2131  ;;  %v1194_v54 = vsel %vm931_vm9, %v2670_v5, 0.0 }
 0x341   :  { %v1178_v27 = vmul.f32 1.442695, %v1167_v8  ;;  %v1188_v31 = vsel %vm931_vm9, %v2672_v9, 0.0  ;;  %1195 = vadd.xlane.f32.xlu0 %v1194_v54 }
 0x342   :  { %1189 = vadd.xlane.f32.xlu2 %v1188_v31 }
 0x343   :  { %2133 = vpow2.f32 %v1178_v27  ;;  %v1145_v18 = vpop.xlane.xlu1 %1144 }
 0x344   :  { %v1165_v49 = vsub.f32 %v981_v48, %v1145_v18 }
 0x346   :  { %v1174_v12 = vmul.f32 1.442695, %v1165_v49  ;;  %v1160_v13 = vpop.xlane.xlu0 %1159 }
 0x347   :  { %v1170_v58 = vsub.f32 %v1111_v50, %v1160_v13 }
 0x348   :  { %2135 = vpow2.f32 %v1174_v12 }
 0x349   :  { %v2678_v14 = vpop.eup %2133  ;;  %v1184_v16 = vmul.f32 1.442695, %v1170_v58 }
 0x34a   :  { %v1197_v15 = vsel %vm931_vm9, %v2678_v14, 0.0 }
 0x34b   :  { %1198 = vadd.xlane.f32.xlu2 %v1197_v15  ;;  %v1157_v17 = vpop.xlane.xlu1 %1156  ;;  %2137 = vpow2.f32 %v1184_v16 }
 0x34c   :  { %v1169_v24 = vsub.f32 %v2656_v52, %v1157_v17 }
 0x34e   :  { %v1154_v62 = vpop.xlane.xlu0 %1153  ;;  %v2682_v21 = vpop.eup %2135  ;;  %v1182_v30 = vmul.f32 1.442695, %v1169_v24 }
 0x34f   :  { %v1168_v23 = vsub.f32 %v1059_v55, %v1154_v62  ;;  %v1191_v28 = vsel %vm931_vm9, %v2682_v21, 0.0 }
 0x351   :  { %v1180_v25 = vmul.f32 1.442695, %v1168_v23  ;;  %v2687_v34 = vpop.eup %2137 }
 0x352   :  { %v1206_v36 = vsel %vm931_vm9, %v2687_v34, 0.0 }
 0x353   :  { %2139 = vpow2.f32 %v1180_v25  ;;  %1192 = vadd.xlane.f32.xlu2 %v1191_v28  ;;  %v1163_v29 = vpop.xlane.xlu2 %1162 }
 0x354   :  { %v1171_v33 = vsub.f32 %v1137_v60, %v1163_v29  ;;  %2141 = vpow2.f32 %v1182_v30 }
 0x355   :  { %914 = vperm.xlu0 %2115, %v909_v26  }
 0x356   :  { %v1186_v11 = vmul.f32 1.442695, %v1171_v33 }
 0x358   :  { %2143 = vpow2.f32 %v1186_v11 }
 0x359   :  { %v2689_v45 = vpop.eup %2139 }
 0x35a   :  { %v1200_v37 = vsel %vm931_vm9, %v2689_v45, 0.0  ;;  %v2695_v39 = vpop.eup %2141 }
 0x35b   :  { %1207 = vadd.xlane.f32.xlu2 %v1206_v36  ;;  %1201 = vadd.xlane.f32.xlu1 %v1200_v37  ;;  %v1203_v40 = vsel %vm931_vm9, %v2695_v39, 0.0  ;;  %v222_v48 = vpop.permute.xlu2 %221 }
 0x35c   :  { %v366_v52 = vrot.slane %v222_v48, 4 }
 0x35e   :  { %v2697_v56 = vpop.eup %2143 }
 0x35f   :  { %v1209_v35 = vsel %vm931_vm9, %v2697_v56, 0.0 }
 0x361   :  { %v234_v43 = vpop.permute.xlu0 %233 }
 0x362   :  { %v364_v50 = vrot.slane %v234_v43, 4  ;;  %v367_v57 = vsel %vm240_vm8, %v234_v43, %v366_v52 }
 0x363   :  { %1204 = vadd.xlane.f32.xlu2 %v1203_v40  ;;  %1210 = vadd.xlane.f32.xlu1 %v1209_v35  ;;  %v228_v6 = vpop.permute.xlu1 %227  ;;  %v375_v44 = vperm.slane %v367_v57, %v2394_v61 }
 0x364   :  { %v352_v7 = vrot.slane %v228_v6, 4  ;;  %v355_v47 = vsel %vm240_vm8, %v228_v6, %v354_v42  ;;  %v365_v46 = vsel %vm240_vm8, %v364_v50, %v222_v48 }
 0x365   :  { %v363_v51 = vperm.slane %v355_v47, %v2394_v61  ;;  %v371_v59 = vperm.slane %v365_v46, %v2394_v61  ;;  %v388_v1 = vrot.slane %v375_v44, 4 }
 0x366   :  { %v353_v38 = vsel %vm240_vm8, %v352_v7, %v216_v53 }
 0x367   :  { %v359_v55 = vperm.slane %v353_v38, %v2394_v61  ;;  %v390_v60 = vrot.slane %v363_v51, 4  ;;  %v376_v3 = vrot.slane %v371_v59, 4  ;;  %v389_v32 = vsel %vm240_vm8, %v388_v1, %v363_v51 }
 0x368   :  { %v395_v18 = vperm.slane %v389_v32, %v2407_v19 }
 0x369   :  { %v378_v63 = vrot.slane %v359_v55, 4  ;;  %v391_v2 = vsel %vm240_vm8, %v375_v44, %v390_v60  ;;  %v230_v53 = vpop.permute.xlu0 %229  ;;  %v377_v8 = vsel %vm240_vm8, %v376_v3, %v359_v55 }
 0x36a   :  { %v399_v41 = vperm.slane %v391_v2, %v2407_v19  ;;  %v383_v49 = vperm.slane %v377_v8, %v2407_v19  ;;  %v404_v58 = vrot.slane %v395_v18, 4  ;;  %v520_v23 = vrot.slane %v230_v53, 4 }
 0x36b   :  { %v379_v0 = vsel %vm240_vm8, %v371_v59, %v378_v63  ;;  %v218_v31 = vpop.permute.xlu1 %217 }
 0x36c   :  { %v387_v4 = vperm.slane %v379_v0, %v2407_v19  ;;  %v406_v54 = vrot.slane %v399_v41, 4  ;;  %v400_v15 = vrot.slane %v383_v49, 4  ;;  %v405_v24 = vsel %vm240_vm8, 0.0, %v404_v58 }
 0x36d   :  { %v521_v36 = vsel %vm240_vm8, %v520_v23, %v218_v31  ;;  %v522_v37 = vrot.slane %v218_v31, 4 }
 0x36e   :  { %v402_v27 = vrot.slane %v387_v4, 4  ;;  %v407_v12 = vsel %vm240_vm8, 0.0, %v406_v54  ;;  %v811_v16 = vsel %vm240_vm8, %v406_v54, %v395_v18  ;;  %v401_v29 = vsel %vm240_vm8, 0.0, %v400_v15 }
 0x36f   :  { %v816_v17 = vrot.slane %v407_v12, 4  ;;  %v815_v26 = vperm.slane %v811_v16, %v2394_v61  ;;  %v527_v47 = vperm.slane %v521_v36, %v2394_v61  ;;  %v523_v38 = vsel %vm240_vm8, %v230_v53, %v522_v37 }
 0x370   :  { %v403_v13 = vsel %vm240_vm8, 0.0, %v402_v27  ;;  %v800_v25 = vsel %vm240_vm8, %v402_v27, %v383_v49  ;;  %v531_v60 = vperm.slane %v523_v38, %v2394_v61 }
 0x371   :  { %v236_v62 = vpop.permute.xlu0 %235  ;;  %v805_v20 = vrot.slane %v403_v13, 4  ;;  %v817_v30 = vsel %vm240_vm8, %v816_v17, %v405_v24  ;;  %v804_v40 = vperm.slane %v800_v25, %v2394_v61  ;;  %v546_v63 = vrot.slane %v527_v47, 4 }
 0x372   :  { %v532_v28 = vrot.slane %v236_v62, 4  ;;  %v821_v35 = vperm.slane %v817_v30, %v2394_v61  ;;  %v558_v8 = vrot.slane %v531_v60, 4 }
 0x373   :  { %v224_v33 = vpop.permute.xlu1 %223  ;;  %v806_v11 = vsel %vm240_vm8, %v805_v20, %v401_v29  ;;  %v824_v51 = vrot.slane %v804_v40, 4 }
 0x374   :  { %v533_v6 = vsel %vm240_vm8, %v532_v28, %v224_v33  ;;  %v534_v7 = vrot.slane %v224_v33, 4  ;;  %v810_v43 = vperm.slane %v806_v11, %v2394_v61  ;;  %v834_v46 = vrot.slane %v821_v35, 4 }
 0x375   :  { %v539_v50 = vperm.slane %v533_v6, %v2394_v61 }
 0x376   :  { %v535_v55 = vsel %vm240_vm8, %v236_v62, %v534_v7  ;;  %v822_v57 = vrot.slane %v810_v43, 4  ;;  %v825_v59 = vsel %vm240_vm8, %v810_v43, %v824_v51  ;;  %v835_v32 = vsel %vm240_vm8, %v834_v46, %v815_v26 }
 0x377   :  { %v544_v44 = vrot.slane %v539_v50, 4  ;;  %v543_v1 = vperm.slane %v535_v55, %v2394_v61  ;;  %v547_v3 = vsel %vm240_vm8, %v539_v50, %v546_v63  ;;  %v833_v27 = vperm.slane %v825_v59, %v2407_v19 }
 0x378   :  { %v823_v53 = vsel %vm240_vm8, %v822_v57, %v804_v40  ;;  %v555_v18 = vperm.slane %v547_v3, %v2407_v19  ;;  %v841_v17 = vperm.slane %v835_v32, %v2407_v19 }
 0x379   :  { %v545_v31 = vsel %vm240_vm8, %v544_v44, %v527_v47  ;;  %v556_v58 = vrot.slane %v543_v1, 4  ;;  %v829_v16 = vperm.slane %v823_v53, %v2407_v19  ;;  %v559_v29 = vsel %vm240_vm8, %v543_v1, %v558_v8 }
 0x37a   :  { %v551_v28 = vperm.slane %v545_v31, %v2407_v19  ;;  %v846_v36 = vrot.slane %v841_v17, 4  ;;  %v852_v6 = vrot.slane %v833_v27, 4  ;;  %v570_v7 = vrot.slane %v555_v18, 4 }
 0x37b   :  { %v848_v37 = vrot.slane %v829_v16, 4  ;;  %v567_v47 = vperm.slane %v559_v29, %v2407_v19 }
 0x37c   :  { %921 = vperm.xlu1 %2116, %v916_v22   ;;  %v836_v22 = vrot.slane %v815_v26, 4  ;;  %v568_v51 = vrot.slane %v551_v28, 4 }
 0x37d   :  { %v849_v55 = vsel %vm240_vm8, %v841_v17, %v848_v37  ;;  %v574_v53 = vrot.slane %v567_v47, 4 }
 0x37e   :  { %v837_v52 = vsel %vm240_vm8, %v821_v35, %v836_v22  ;;  %v569_v32 = vsel %vm240_vm8, 0.0, %v568_v51 }
 0x37f   :  { %v845_v2 = vperm.slane %v837_v52, %v2407_v19  ;;  %v847_v52 = vsel %vm240_vm8, %v846_v36, %v829_v16 }
 0x381   :  { %v850_v13 = vrot.slane %v845_v2, 4  ;;  %v853_v63 = vsel %vm240_vm8, %v845_v2, %v852_v6 }
 0x383   :  { %v851_v57 = vsel %vm240_vm8, %v850_v13, %v833_v27  ;;  %v854_v27 = vsel %vm240_vm8, %v570_v7, %v551_v28 }
 0x3b4   :  { %v1196_v42 = vpop.xlane.xlu0 %1195 }
 0x3b5   :  { %v1190_v48 = vpop.xlane.xlu2 %1189  ;;  %2145 = vrcp.f32 %v1196_v42  ;;  %v1253_v23 = vand.u32 2147483648, %v1196_v42  ;;  %v1251_v26 = vand.u32 2147483647, %v1196_v42  ;;  %vm1247_vm12 = vweird.f32 %v1196_v42 }
 0x3b6   :  { %2147 = vrcp.f32 %v1190_v48  ;;  %v1223_v62 = vand.u32 2147483648, %v1190_v48  ;;  %v1221_v25 = vand.u32 2147483647, %v1190_v48  ;;  %vm1217_vm13 = vweird.f32 %v1190_v48 }
 0x3b7   :  { %v1254_v22 = vor.u32 1.1754944e-38, %v1253_v23  ;;  %vm1252_vm2 = vcmp.eq.f32.partialorder %v1251_v26, 8.507059e+37 }
 0x3b8   :  { %v1224_v40 = vor.u32 1.1754944e-38, %v1223_v62  ;;  %vm1222_vm1 = vcmp.eq.f32.partialorder %v1221_v25, 8.507059e+37 }
 0x3bb   :  { %v2146_v0 = vpop.eup %2145 }
 0x3bc   :  { %v2148_v41 = vpop.eup %2147  ;;  %v1243_v4 = vmul.f32 %v2146_v0, %v1196_v42  ;;  %vm1248_vm10 = vweird.f32 %v2146_v0  ;;  %v557_v42 = vsel %vm240_vm8, %v556_v58, %v531_v60  ;;  %v571_v60 = vsel %vm240_vm8, 0.0, %v570_v7 }
 0x3bd   :  { %v1213_v54 = vmul.f32 %v2148_v41, %v1190_v48  ;;  %vm1218_vm11 = vweird.f32 %v2148_v41  ;;  %vm2754_vm14 = vmor %vm1247_vm12, %vm1248_vm10  ;;  %v859_v2 = vrot.slane %v571_v60, 4  ;;  %v858_v58 = vperm.slane %v854_v27, %v2394_v61 }
 0x3be   :  { %v1244_v49 = vsub.f32 1.0, %v1243_v4  ;;  %v2748_v12 = vpop.xlane.xlu2 %1198  ;;  %vm1219_vm15 = vmor %vm1217_vm13, %vm1218_vm11  ;;  %v563_v4 = vperm.slane %v557_v42, %v2407_v19 }
 0x3bf   :  { %v1214_v15 = vsub.f32 1.0, %v1213_v54  ;;  %2149 = vrcp.f32 %v2748_v12  ;;  %v860_v31 = vsel %vm240_vm8, %v859_v2, %v569_v32 }
 0x3c0   :  { %v1245_v20 = vmul.f32 %v2146_v0, %v1244_v49  ;;  %v572_v8 = vrot.slane %v563_v4, 4  ;;  %v865_v62 = vsel %vm240_vm8, %v574_v53, %v563_v4 }
 0x3c1   :  { %v1215_v24 = vmul.f32 %v2148_v41, %v1214_v15  ;;  %v864_v15 = vperm.slane %v860_v31, %v2394_v61  ;;  %v869_v11 = vperm.slane %v865_v62, %v2394_v61 }
 0x3c2   :  { %v1246_v30 = vadd.f32 %v2146_v0, %v1245_v20  ;;  %v573_v13 = vsel %vm240_vm8, 0.0, %v572_v8 }
 0x3c3   :  { %v1216_v33 = vadd.f32 %v2148_v41, %v1215_v24  ;;  %v876_v29 = vrot.slane %v864_v15, 4 }
 0x3c4   :  { %v1250_v35 = vsel %vm2754_vm14, %v2146_v0, %v1246_v30  ;;  %v878_v30 = vrot.slane %v858_v58, 4  ;;  %vm1262_vm14 = vweird.f32 %v2748_v12 }
 0x3c5   :  { %v1220_v43 = vsel %vm1219_vm15, %v2148_v41, %v1216_v33  ;;  %v1255_v38 = vsel %vm1252_vm2, %v1254_v22, %v1250_v35  ;;  %v2780_v18 = vpop.eup %2149  ;;  %v877_v32 = vsel %vm240_vm8, %v876_v29, %v858_v58 }
 0x3c6   :  { %v1225_v48 = vsel %vm1222_vm1, %v1224_v40, %v1220_v43  ;;  %v2762_v50 = vpop.xlane.xlu2 %1192  ;;  %v1334_v41 = vmul.f32 %v2670_v5, %v1255_v38  ;;  %v1258_v17 = vmul.f32 %v2780_v18, %v2748_v12  ;;  %v879_v38 = vsel %vm240_vm8, %v864_v15, %v878_v30 }
 0x3c7   :  { %v915_v46 = vpop.permute.xlu0 %914  ;;  %v1332_v3 = vmul.f32 %v2672_v9, %v1225_v48  ;;  %v575_v9 = vsel %vm240_vm8, 0.0, %v574_v53  ;;  %2151 = vrcp.f32 %v2762_v50  ;;  %v887_v4 = vperm.slane %v879_v38, %v2407_v19 }
 0x3c8   :  { %v923_v44 = vmul.f32 %v915_v46, %v847_v52  ;;  %v925_v59 = vmul.f32 %v915_v46, %v849_v55  ;;  %v927_v0 = vmul.f32 %v915_v46, %v851_v57  ;;  %v929_v1 = vmul.f32 %v915_v46, %v853_v63 }
 0x3c9   :  { %v870_v49 = vrot.slane %v575_v9, 4  ;;  %v1259_v36 = vsub.f32 1.0, %v1258_v17  ;;  %v890_v55 = vrot.slane %v869_v11, 4  ;;  %vm1263_vm13 = vweird.f32 %v2780_v18 }
 0x3ca   :  { %1358 = vmatpush.msra.mxu3 %v923_v44  ;;  %1404 = vmatpush.msra.mxu1 %v925_v59  ;;  %vm2827_vm15 = vmor %vm1262_vm14, %vm1263_vm13  ;;  %v1266_v15 = vand.u32 2147483647, %v2748_v12  ;;  %v1238_v30 = vand.u32 2147483648, %v2762_v50 }
 0x3cb   :  { %2078 = vmatmul.msk.f32.vlgmr.msra.gmra.mxu3 %vm931_vm9, %v1332_v3  ;;  %2080 = vmatmul.msk.f32.vlgmr.msra.gmra.mxu1 %vm931_vm9, %v1334_v41  ;;  %v871_v23 = vsel %vm240_vm8, %v870_v49, %v573_v13  ;;  %v1260_v57 = vmul.f32 %v2780_v18, %v1259_v36  ;;  %v1268_v49 = vand.u32 2147483648, %v2748_v12  ;;  %v1236_v12 = vand.u32 2147483647, %v2762_v50 }
 0x3cc   :  { %1450 = vmatpush.msrb.mxu3 %v927_v0  ;;  %1496 = vmatpush.msrb.mxu1 %v929_v1  ;;  %v875_v40 = vperm.slane %v871_v23, %v2394_v61  ;;  %vm1267_vm2 = vcmp.eq.f32.partialorder %v1266_v15, 8.507059e+37 }
 0x3cd   :  { %v2785_v16 = vpop.eup %2151  ;;  %v1261_v9 = vadd.f32 %v2780_v18, %v1260_v57  ;;  %v1269_v29 = vor.u32 1.1754944e-38, %v1268_v49 }
 0x3ce   :  { %v1208_v5 = vpop.xlane.xlu2 %1207  ;;  %v1202_v54 = vpop.xlane.xlu1 %1201  ;;  %v1228_v35 = vmul.f32 %v2785_v16, %v2762_v50  ;;  %v888_v52 = vrot.slane %v875_v40, 4  ;;  %v891_v8 = vsel %vm240_vm8, %v875_v40, %v890_v55  ;;  %vm1233_vm1 = vweird.f32 %v2785_v16 }
 0x3cf   :  { %2153 = vrcp.f32 %v1208_v5  ;;  %v1313_v22 = vand.u32 2147483648, %v1208_v5  ;;  %v1311_v43 = vand.u32 2147483647, %v1208_v5  ;;  %v1283_v42 = vand.u32 2147483648, %v1202_v54 }
 0x3d0   :  { %2155 = vrcp.f32 %v1202_v54  ;;  %v1281_v48 = vand.u32 2147483647, %v1202_v54  ;;  %vm1307_vm5 = vweird.f32 %v1208_v5  ;;  %vm1277_vm7 = vweird.f32 %v1202_v54 }
 0x3d1   :  { %v1314_v46 = vor.u32 1.1754944e-38, %v1313_v22  ;;  %v1229_v59 = vsub.f32 1.0, %v1228_v35  ;;  %vm1312_vm10 = vcmp.eq.f32.partialorder %v1311_v43, 8.507059e+37  ;;  %v1284_v60 = vor.u32 1.1754944e-38, %v1283_v42 }
 0x3d2   :  { %vm1282_vm12 = vcmp.eq.f32.partialorder %v1281_v48, 8.507059e+37  ;;  %v899_v13 = vperm.slane %v891_v8, %v2407_v19  ;;  %v1265_v62 = vsel %vm2827_vm15, %v2780_v18, %v1261_v9  ;;  %v1239_v22 = vor.u32 1.1754944e-38, %v1238_v30 }
 0x3d3   :  { %v1230_v27 = vmul.f32 %v2785_v16, %v1229_v59 }
 0x3d5   :  { %v2154_v20 = vpop.eup %2153  ;;  %v1231_v23 = vadd.f32 %v2785_v16, %v1230_v27 }
 0x3d6   :  { %v2156_v24 = vpop.eup %2155  ;;  %v1303_v25 = vmul.f32 %v2154_v20, %v1208_v5  ;;  %v2791_v26 = vpop.xlane.xlu2 %1204  ;;  %vm1308_vm3 = vweird.f32 %v2154_v20 }
 0x3d7   :  { %v2793_v28 = vpop.xlane.xlu1 %1210  ;;  %v1273_v33 = vmul.f32 %v2156_v24, %v1202_v54  ;;  %2157 = vrcp.f32 %v2791_v26  ;;  %vm1278_vm4 = vweird.f32 %v2156_v24  ;;  %vm1309_vm6 = vmor %vm1307_vm5, %vm1308_vm3  ;;  %v889_v54 = vsel %vm240_vm8, %v888_v52, %v869_v11 }
 0x3d8   :  { %v1304_v37 = vsub.f32 1.0, %v1303_v25  ;;  %2159 = vrcp.f32 %v2793_v28  ;;  %vm1279_vm11 = vmor %vm1277_vm7, %vm1278_vm4  ;;  %v895_v17 = vperm.slane %v889_v54, %v2407_v19  ;;  %v904_v11 = vrot.slane %v899_v13, 4 }
 0x3d9   :  { %v1274_v6 = vsub.f32 1.0, %v1273_v33  ;;  %vm1232_vm3 = vweird.f32 %v2762_v50  ;;  %vm1237_vm5 = vcmp.eq.f32.partialorder %v1236_v12, 8.507059e+37  ;;  %v1296_v59 = vand.u32 2147483647, %v2791_v26 }
 0x3da   :  { %v1305_v7 = vmul.f32 %v2154_v20, %v1304_v37  ;;  %v900_v36 = vrot.slane %v895_v17, 4  ;;  %v1270_v37 = vsel %vm1267_vm2, %v1269_v29, %v1265_v62  ;;  %vm1234_vm4 = vmor %vm1232_vm3, %vm1233_vm1  ;;  %v905_v43 = vsel %vm240_vm8, %v904_v11, %v887_v4 }
 0x3db   :  { %v1275_v47 = vmul.f32 %v2156_v24, %v1274_v6  ;;  %v1235_v35 = vsel %vm1234_vm4, %v2785_v16, %v1231_v23  ;;  %v1335_v50 = vmul.f32 %v2678_v14, %v1270_v37  ;;  %vm1297_vm14 = vcmp.eq.f32.partialorder %v1296_v59, 8.507059e+37 }
 0x3dc   :  { %v1306_v51 = vadd.f32 %v2154_v20, %v1305_v7  ;;  %v1240_v48 = vsel %vm1237_vm5, %v1239_v22, %v1235_v35  ;;  %vm1773_vm1 = vcmask 195584  }
 0x3dd   :  { %v1276_v63 = vadd.f32 %v2156_v24, %v1275_v47  ;;  %v2803_v44 = vpop.eup %2157  ;;  %v1298_v47 = vand.u32 2147483648, %v2791_v26 }
 0x3de   :  { %v1310_v0 = vsel %vm1309_vm6, %v2154_v20, %v1306_v51  ;;  %v2806_v1 = vpop.eup %2159  ;;  %v1288_v31 = vmul.f32 %v2803_v44, %v2791_v26  ;;  %v906_v20 = vrot.slane %v887_v4, 4  ;;  %vm1292_vm6 = vweird.f32 %v2791_v26 }
 0x3df   :  { %v1315_v3 = vsel %vm1312_vm10, %v1314_v46, %v1310_v0  ;;  %v1280_v41 = vsel %vm1279_vm11, %v2156_v24, %v1276_v63  ;;  %vm1293_vm7 = vweird.f32 %v2803_v44  ;;  %vm1323_vm10 = vweird.f32 %v2806_v1 }
 0x3e0   :  { %v1285_v53 = vsel %vm1282_vm12, %v1284_v60, %v1280_v41  ;;  %v1338_v2 = vmul.f32 %v2687_v34, %v1315_v3  ;;  %v1318_v34 = vmul.f32 %v2806_v1, %v2793_v28  ;;  %v1289_v24 = vsub.f32 1.0, %v1288_v31  ;;  %vm2856_vm11 = vmor %vm1292_vm6, %vm1293_vm7 }
 0x3e1   :  { %v1336_v5 = vmul.f32 %v2689_v45, %v1285_v53  ;;  %v883_v45 = vperm.slane %v877_v32, %v2407_v19  ;;  %v907_v7 = vsel %vm240_vm8, %v899_v13, %v906_v20  ;;  %v1328_v51 = vand.u32 2147483648, %v2793_v28 }
 0x3e2   :  { %2084 = vmatmul.msk.f32.vlgmr.msrb.gmra.mxu1 %vm931_vm9, %v1338_v2  ;;  %v1319_v25 = vsub.f32 1.0, %v1318_v34  ;;  %v1290_v18 = vmul.f32 %v2803_v44, %v1289_v24  ;;  %vm1322_vm12 = vweird.f32 %v2793_v28  ;;  %v1326_v0 = vand.u32 2147483647, %v2793_v28 }
 0x3e3   :  { %2082 = vmatmul.msk.f32.vlgmr.msrb.gmra.mxu3 %vm931_vm9, %v1336_v5  ;;  %v902_v33 = vrot.slane %v883_v45, 4  ;;  %v901_v42 = vsel %vm240_vm8, %v900_v36, %v883_v45  ;;  %v1333_v60 = vmul.f32 %v2682_v21, %v1240_v48  ;;  %vm1324_vm13 = vmor %vm1322_vm12, %vm1323_vm10  ;;  %v1299_v26 = vor.u32 1.1754944e-38, %v1298_v47 }
 0x3e4   :  { %v1320_v40 = vmul.f32 %v2806_v1, %v1319_v25  ;;  %v1291_v16 = vadd.f32 %v2803_v44, %v1290_v18  ;;  %v1329_v4 = vor.u32 1.1754944e-38, %v1328_v51  ;;  %vm1327_vm15 = vcmp.eq.f32.partialorder %v1326_v0, 8.507059e+37 }
 0x3e5   :  { %v903_v6 = vsel %vm240_vm8, %v895_v17, %v902_v33 }
 0x3e6   :  { %v1321_v38 = vadd.f32 %v2806_v1, %v1320_v40  ;;  %v1295_v3 = vsel %vm2856_vm11, %v2803_v44, %v1291_v16 }
 0x3e7   :  { %v1300_v21 = vsel %vm1297_vm14, %v1299_v26, %v1295_v3 }
 0x3e8   :  { %v1325_v41 = vsel %vm1324_vm13, %v2806_v1, %v1321_v38  ;;  %v1337_v53 = vmul.f32 %v2695_v39, %v1300_v21  ;;  %vm2004_vm13 = vcmask 523264  }
 0x3e9   :  { %v1330_v28 = vsel %vm1327_vm15, %v1329_v4, %v1325_v41 }
 0x3ea   :  { %v1339_v2 = vmul.f32 %v2697_v56, %v1330_v28 }
 0x3ee   :  { %v922_v52 = vpop.permute.xlu1 %921 }
 0x3ef   :  { %v926_v55 = vmul.f32 %v922_v52, %v903_v6  ;;  %v928_v57 = vmul.f32 %v922_v52, %v905_v43  ;;  %v930_v46 = vmul.f32 %v922_v52, %v907_v7  ;;  %v924_v14 = vmul.f32 %v922_v52, %v901_v42 }
 0x3f1   :  { %1381 = vmatpush.msrb.mxu0 %v924_v14  ;;  %1427 = vmatpush.msra.mxu2 %v926_v55 }
 0x3f2   :  { %2079 = vmatmul.msk.f32.vlgmr.msrb.gmra.mxu0 %vm931_vm9, %v1333_v60  ;;  %2081 = vmatmul.msk.f32.vlgmr.msra.gmra.mxu2 %vm931_vm9, %v1335_v50 }
 0x3f3   :  { %1473 = vmatpush.msra.mxu0 %v928_v57  ;;  %1519 = vmatpush.msrb.mxu2 %v930_v46 }
 0x3fa   :  { %2083 = vmatmul.msk.f32.vlgmr.msra.gmra.mxu0 %vm931_vm9, %v1337_v53  ;;  %2085 = vmatmul.msk.f32.vlgmr.msrb.gmra.mxu2 %vm931_vm9, %v1339_v2 }
 0x448   :  { %v1406_v44 = vpop.f32.mrf.mxu1 }
 0x449   :  { %v1538_v32 = vrot.slane %v1406_v44, 4 }
 0x44e   :  { %v1360_v1 = vpop.f32.mrf.mxu3 }
 0x44f   :  { %v1526_v31 = vrot.slane %v1360_v1, 4 }
 0x45f   :  { %v1498_v8 = vpop.f32.mrf.mxu1 }
 0x460   :  { %v1536_v9 = vrot.slane %v1498_v8, 4  ;;  %v1539_v5 = vsel %vm240_vm8, %v1498_v8, %v1538_v32 }
 0x461   :  { %v1547_v27 = vperm.slane %v1539_v5, %v2394_v61 }
 0x462   :  { %v1537_v54 = vsel %vm240_vm8, %v1536_v9, %v1406_v44 }
 0x463   :  { %v1543_v39 = vperm.slane %v1537_v54, %v2394_v61  ;;  %v1560_v45 = vrot.slane %v1547_v27, 4 }
 0x465   :  { %v1548_v15 = vrot.slane %v1543_v39, 4 }
 0x466   :  { %v1452_v34 = vpop.f32.mrf.mxu3 }
 0x467   :  { %v1524_v56 = vrot.slane %v1452_v34, 4  ;;  %v1527_v49 = vsel %vm240_vm8, %v1452_v34, %v1526_v31 }
 0x468   :  { %v1535_v13 = vperm.slane %v1527_v49, %v2394_v61 }
 0x469   :  { %v1525_v58 = vsel %vm240_vm8, %v1524_v56, %v1360_v1 }
 0x46a   :  { %v1531_v17 = vperm.slane %v1525_v58, %v2394_v61  ;;  %v1561_v62 = vsel %vm240_vm8, %v1560_v45, %v1535_v13  ;;  %v1562_v20 = vrot.slane %v1535_v13, 4 }
 0x46b   :  { %v1567_v23 = vperm.slane %v1561_v62, %v2407_v19 }
 0x46c   :  { %v1549_v24 = vsel %vm240_vm8, %v1548_v15, %v1531_v17  ;;  %v1550_v25 = vrot.slane %v1531_v17, 4  ;;  %v1563_v29 = vsel %vm240_vm8, %v1547_v27, %v1562_v20 }
 0x46d   :  { %v1555_v30 = vperm.slane %v1549_v24, %v2407_v19  ;;  %v1571_v33 = vperm.slane %v1563_v29, %v2407_v19  ;;  %v1576_v36 = vrot.slane %v1567_v23, 4 }
 0x46e   :  { %v1551_v11 = vsel %vm240_vm8, %v1543_v39, %v1550_v25 }
 0x46f   :  { %v1559_v12 = vperm.slane %v1551_v11, %v2407_v19  ;;  %v1578_v37 = vrot.slane %v1571_v33, 4  ;;  %v1383_v18 = vpop.f32.mrf.mxu0  ;;  %v1572_v40 = vrot.slane %v1555_v30, 4  ;;  %v1577_v50 = vsel %vm240_vm8, 0.0, %v1576_v36 }
 0x470   :  { %v1582_v46 = vrot.slane %v1383_v18, 4 }
 0x471   :  { %v1574_v35 = vrot.slane %v1559_v12, 4  ;;  %v1579_v22 = vsel %vm240_vm8, 0.0, %v1578_v37  ;;  %v1647_v6 = vsel %vm240_vm8, %v1578_v37, %v1567_v23  ;;  %v1573_v55 = vsel %vm240_vm8, 0.0, %v1572_v40 }
 0x472   :  { %v1651_v7 = vperm.slane %v1647_v6, %v2394_v61  ;;  %v1652_v43 = vrot.slane %v1579_v22, 4 }
 0x473   :  { %v1575_v42 = vsel %vm240_vm8, 0.0, %v1574_v35  ;;  %v1636_v47 = vsel %vm240_vm8, %v1574_v35, %v1555_v30 }
 0x474   :  { %v1653_v48 = vsel %vm240_vm8, %v1652_v43, %v1577_v50  ;;  %v1640_v16 = vperm.slane %v1636_v47, %v2394_v61  ;;  %v1641_v38 = vrot.slane %v1575_v42, 4  ;;  %v1672_v51 = vrot.slane %v1651_v7, 4 }
 0x475   :  { %v1429_v52 = vpop.f32.mrf.mxu2  ;;  %v1657_v57 = vperm.slane %v1653_v48, %v2394_v61 }
 0x476   :  { %v1642_v14 = vsel %vm240_vm8, %v1641_v38, %v1573_v55  ;;  %v1660_v63 = vrot.slane %v1640_v16, 4  ;;  %v1594_v5 = vrot.slane %v1429_v52, 4 }
 0x477   :  { %v1475_v59 = vpop.f32.mrf.mxu0  ;;  %v1646_v0 = vperm.slane %v1642_v14, %v2394_v61  ;;  %v1673_v60 = vsel %vm240_vm8, %v1657_v57, %v1672_v51  ;;  %v1670_v3 = vrot.slane %v1657_v57, 4 }
 0x478   :  { %v1580_v41 = vrot.slane %v1475_v59, 4  ;;  %v1583_v26 = vsel %vm240_vm8, %v1475_v59, %v1582_v46  ;;  %v1681_v4 = vperm.slane %v1673_v60, %v2407_v19 }
 0x479   :  { %v1661_v21 = vsel %vm240_vm8, %v1646_v0, %v1660_v63  ;;  %v1658_v28 = vrot.slane %v1646_v0, 4  ;;  %v1671_v53 = vsel %vm240_vm8, %v1670_v3, %v1651_v7  ;;  %v1591_v8 = vperm.slane %v1583_v26, %v2394_v61 }
 0x47a   :  { %v1581_v2 = vsel %vm240_vm8, %v1580_v41, %v1383_v18  ;;  %v1669_v44 = vperm.slane %v1661_v21, %v2407_v19  ;;  %v1686_v1 = vrot.slane %v1681_v4, 4  ;;  %v1677_v32 = vperm.slane %v1671_v53, %v2407_v19 }
 0x47b   :  { %v1659_v9 = vsel %vm240_vm8, %v1658_v28, %v1640_v16  ;;  %v1587_v39 = vperm.slane %v1581_v2, %v2394_v61  ;;  %v1618_v13 = vrot.slane %v1591_v8, 4 }
 0x47c   :  { %v1687_v54 = vsel %vm240_vm8, %v1686_v1, %v1669_v44  ;;  %v1665_v27 = vperm.slane %v1659_v9, %v2407_v19  ;;  %v1682_v31 = vrot.slane %v1677_v32, 4  ;;  %v1688_v12 = vrot.slane %v1669_v44, 4 }
 0x47d   :  { %1754 = vrot.lane.b32.xlu1 %v1687_v54, %s2267_s15  ;;  %v1521_v34 = vpop.f32.mrf.mxu2  ;;  %v1606_v20 = vrot.slane %v1587_v39, 4 }
 0x47e   :  { %v1592_v56 = vrot.slane %v1521_v34, 4  ;;  %v1595_v49 = vsel %vm240_vm8, %v1521_v34, %v1594_v5  ;;  %v1684_v45 = vrot.slane %v1665_v27, 4  ;;  %v2919_v15 = vsel %vm240_vm8, %v1682_v31, %v1665_v27  ;;  %v1777_v34 = vld [vmem:[%s3076_s3 + $0x8] sm:$0xff] }
 0x47f   :  { %v1603_v58 = vperm.slane %v1595_v49, %v2394_v61  ;;  %v1689_v50 = vsel %vm240_vm8, %v1681_v4, %v1688_v12 }
 0x480   :  { %v1593_v17 = vsel %vm240_vm8, %v1592_v56, %v1429_v52  ;;  %v1685_v62 = vsel %vm240_vm8, %v1677_v32, %v1684_v45  ;;  %v1776_v56 = vld [vmem:[%s3076_s3] sm:$0xff] }
 0x481   :  { %v1599_v23 = vperm.slane %v1593_v17, %v2394_v61  ;;  %v1616_v24 = vrot.slane %v1603_v58, 4  ;;  %v1619_v25 = vsel %vm240_vm8, %v1603_v58, %v1618_v13  ;;  %1746 = vrot.lane.b32.xlu2 %v1685_v62, %s2251_s30 }
 0x482   :  { %v1627_v29 = vperm.slane %v1619_v25, %v2407_v19 }
 0x483   :  { %v1604_v30 = vrot.slane %v1599_v23, 4  ;;  %v1607_v33 = vsel %vm240_vm8, %v1599_v23, %v1606_v20  ;;  %v1617_v11 = vsel %vm240_vm8, %v1616_v24, %v1591_v8 }
 0x484   :  { %v1615_v36 = vperm.slane %v1607_v33, %v2407_v19  ;;  %v1623_v37 = vperm.slane %v1617_v11, %v2407_v19  ;;  %v1634_v18 = vrot.slane %v1627_v29, 4  ;;  %v2169_v11 = vld [vmem:[#allocation2] sm:$0xff] }
 0x485   :  { %v1605_v40 = vsel %vm240_vm8, %v1604_v30, %v1587_v39  ;;  %v1779_v39 = vld [vmem:[%s3076_s3 + $0x18] sm:$0xff] }
 0x486   :  { %v1611_v35 = vperm.slane %v1605_v40, %v2407_v19  ;;  %v1630_v22 = vrot.slane %v1615_v36, 4  ;;  %v1632_v6 = vrot.slane %v1623_v37, 4  ;;  %v1635_v7 = vsel %vm240_vm8, 0.0, %v1634_v18  ;;  %1798 = vmatpush.msra.mxu3 %v1779_v39 }
 0x487   :  { %v1701_v43 = vsel %vm240_vm8, %v1634_v18, %v1623_v37  ;;  %v1706_v42 = vrot.slane %v1635_v7, 4  ;;  %v2170_v18 = vld [vmem:[#allocation2 + $0x8] sm:$0xff] }
 0x488   :  { %v1628_v47 = vrot.slane %v1611_v35, 4  ;;  %v1631_v48 = vsel %vm240_vm8, 0.0, %v1630_v22  ;;  %v1633_v16 = vsel %vm240_vm8, 0.0, %v1632_v6  ;;  %v1705_v38 = vperm.slane %v1701_v43, %v2394_v61 }
 0x489   :  { %v1695_v51 = vrot.slane %v1631_v48, 4  ;;  %1762 = vrot.lane.b32.xlu2 %v1689_v50, %s2268_s16  ;;  %v1690_v52 = vsel %vm240_vm8, %v1630_v22, %v1611_v35  ;;  %v1707_v55 = vsel %vm240_vm8, %v1706_v42, %v1633_v16 }
 0x48a   :  { %v1629_v57 = vsel %vm240_vm8, 0.0, %v1628_v47  ;;  %v1694_v46 = vperm.slane %v1690_v52, %v2394_v61  ;;  %v1711_v14 = vperm.slane %v1707_v55, %v2394_v61  ;;  %v1726_v63 = vrot.slane %v1705_v38, 4  ;;  %v1870_v52 = vld [vmem:[%s3081_s8 + $0x18] sm:$0xff]  ;;  %v1869_v55 = vld [vmem:[%s3081_s8 + $0x10] sm:$0xff] }
 0x48b   :  { %v1696_v59 = vsel %vm240_vm8, %v1695_v51, %v1629_v57  ;;  %1893 = vmatpush.msrb.mxu0 %v1870_v52  ;;  %v1868_v57 = vld [vmem:[%s3081_s8 + $0x8] sm:$0xff]  ;;  %v1995_v52 = vld [vmem:[%s3083_s10 + $0x18] sm:$0xff] }
 0x48c   :  { %v1700_v0 = vperm.slane %v1696_v59, %v2394_v61  ;;  %v1714_v60 = vrot.slane %v1694_v46, 4  ;;  %v1727_v3 = vsel %vm240_vm8, %v1711_v14, %v1726_v63  ;;  %v1724_v41 = vrot.slane %v1711_v14, 4 }
 0x48d   :  { %v1735_v26 = vperm.slane %v1727_v3, %v2407_v19  ;;  %1894 = vmatpush.msrb.mxu0 %v1869_v55 }
 0x48e   :  { %v1715_v4 = vsel %vm240_vm8, %v1700_v0, %v1714_v60  ;;  %v1712_v21 = vrot.slane %v1700_v0, 4  ;;  %v1725_v28 = vsel %vm240_vm8, %v1724_v41, %v1705_v38  ;;  %v1867_v0 = vld [vmem:[%s3081_s8] sm:$0xff] }
 0x48f   :  { %v1723_v53 = vperm.slane %v1715_v4, %v2407_v19  ;;  %v1740_v2 = vrot.slane %v1735_v26, 4  ;;  %v1731_v44 = vperm.slane %v1725_v28, %v2407_v19  ;;  %1895 = vmatpush.msrb.mxu0 %v1868_v57 }
 0x490   :  { %v1713_v1 = vsel %vm240_vm8, %v1712_v21, %v1694_v46  ;;  %v2119_v21 = vld [vmem:[%s3079_s6] ss:$0 sm:$0xff] }
 0x491   :  { %v1741_v61 = vsel %vm240_vm8, %v1740_v2, %v1723_v53  ;;  %v1742_v32 = vrot.slane %v1723_v53, 4  ;;  %v1719_v8 = vperm.slane %v1713_v1, %v2407_v19  ;;  %v1736_v9 = vrot.slane %v1731_v44, 4  ;;  %v1778_v19 = vld [vmem:[%s3076_s3 + $0x10] sm:$0xff]  ;;  %1896 = vmatpush.msrb.mxu0 %v1867_v0  ;;  %v2120_v2 = vld [vmem:[%s3080_s7] ss:$0 sm:$0xff] }
 0x492   :  { %1756 = vrot.lane.b32.xlu1 %v1741_v61, %s2267_s15  ;;  %1799 = vmatpush.msra.mxu3 %v1778_v19 }
 0x493   :  { %v1743_v5 = vsel %vm240_vm8, %v1735_v26, %v1742_v32  ;;  %v1738_v54 = vrot.slane %v1719_v8, 4  ;;  %v1737_v27 = vsel %vm240_vm8, %v1736_v9, %v1719_v8 }
 0x494   :  { %1764 = vrot.lane.b32.xlu2 %v1743_v5, %s2268_s16  ;;  %1800 = vmatpush.msra.mxu3 %v1777_v34 }
 0x495   :  { %v1739_v31 = vsel %vm240_vm8, %v1731_v44, %v1738_v54  ;;  %vm1770_vm8 = vcmask 130048  }
 0x496   :  { %1748 = vrot.lane.b32.xlu0 %v1739_v31, %s2251_s30  ;;  %1801 = vmatpush.msra.mxu3 %v1776_v56 }
 0x4db   :  { %v1747_v49 = vpop.permute.xlu2 %1746 }
 0x4dc   :  { %v1768_v45 = vsel %vm931_vm9, %v2919_v15, %v1747_v49 }
 0x4e3   :  { %v1763_v58 = vpop.permute.xlu2 %1762 }
 0x4ee   :  { %v1765_v25 = vpop.permute.xlu2 %1764 }
 0x4ef   :  { %v1755_v13 = vpop.permute.xlu1 %1754 }
 0x4f0   :  { %v1771_v17 = vsel %vm1770_vm8, %v1768_v45, %v1755_v13 }
 0x4f1   :  { %v1774_v62 = vsel %vm1773_vm1, %v1771_v17, %v1763_v58 }
 0x4f2   :  { %2086 = vmatmul.msk.f32.vlgmr.msra.gmra.mxu3 %vm76_vm0, %v1774_v62 }
 0x504   :  { %v1757_v23 = vpop.permute.xlu1 %1756 }
 0x508   :  { %v1749_v20 = vpop.permute.xlu0 %1748 }
 0x509   :  { %v1769_v24 = vsel %vm931_vm9, %v1737_v27, %v1749_v20 }
 0x50a   :  { %v1772_v29 = vsel %vm1770_vm8, %v1769_v24, %v1757_v23 }
 0x50b   :  { %v1775_v30 = vsel %vm1773_vm1, %v1772_v29, %v1765_v25 }
 0x50c   :  { %2087 = vmatmul.msk.f32.gmra.mxu3 %vm76_vm0, %v1775_v30 }
 0x575   :  { %v1803_v33 = vpop.f32.mrf.mxu3 }
 0x576   :  { %v1804_v12 = vadd.f32 %v2169_v11, %v1803_v33 }
 0x578   :  { %v2977_v36 = vmul.f32 0.70710677, %v1804_v12 }
 0x57a   :  { %v1813_v15 = vsel %vm76_vm0, %v2977_v36, 0.0 }
 0x57b   :  { %1814 = vadd.xlane.f32.xlu0 %v1813_v15 }
 0x58f   :  { %v1806_v37 = vpop.f32.mrf.mxu3 }
 0x590   :  { %v1807_v40 = vadd.f32 %v2170_v18, %v1806_v37 }
 0x592   :  { %v2981_v35 = vmul.f32 0.70710677, %v1807_v40  ;;  %v1999_v40 = vld [vmem:[%s3083_s10 + $0x38] sm:$0xff] }
 0x593   :  { %2019 = vmatpush.msra.mxu1 %v1999_v40 }
 0x594   :  { %v1816_v22 = vsel %vm76_vm0, %v2981_v35, 0.0 }
 0x595   :  { %1817 = vadd.xlane.f32.xlu1 %v1816_v22 }
 0x5ee   :  { %v1815_v6 = vpop.xlane.xlu0 %1814 }
 0x5ef   :  { %v1819_v7 = vmul.f32 %v1815_v6, %v2346_v10 }
 0x5f1   :  { %v1821_v43 = vsub.f32 %v2977_v36, %v1819_v7  ;;  %v1998_v7 = vld [vmem:[%s3083_s10 + $0x30] sm:$0xff] }
 0x5f2   :  { %2020 = vmatpush.msra.mxu1 %v1998_v7 }
 0x5f3   :  { %v1823_v42 = vmul.f32 %v1821_v43, %v1821_v43 }
 0x5f5   :  { %v1825_v50 = vsel %vm76_vm0, %v1823_v42, 0.0 }
 0x5f6   :  { %1826 = vadd.xlane.f32.xlu2 %v1825_v50  ;;  %v1997_v50 = vld [vmem:[%s3083_s10 + $0x28] sm:$0xff] }
 0x5f7   :  { %2021 = vmatpush.msra.mxu1 %v1997_v50 }
 0x608   :  { %v1818_v47 = vpop.xlane.xlu1 %1817 }
 0x609   :  { %v1820_v48 = vmul.f32 %v1818_v47, %v2346_v10 }
 0x60b   :  { %v1822_v16 = vsub.f32 %v2981_v35, %v1820_v48 }
 0x60d   :  { %v1824_v38 = vmul.f32 %v1822_v16, %v1822_v16 }
 0x60f   :  { %v1828_v51 = vsel %vm76_vm0, %v1824_v38, 0.0  ;;  %v1996_v38 = vld [vmem:[%s3083_s10 + $0x20] sm:$0xff] }
 0x610   :  { %1829 = vadd.xlane.f32.xlu0 %v1828_v51  ;;  %2022 = vmatpush.msra.mxu1 %v1996_v38 }
 0x612   :  { %2023 = vmatpush.msra.mxu1 %v1995_v52 }
 0x669   :  { %v1827_v46 = vpop.xlane.xlu2 %1826 }
 0x66a   :  { %v1831_v14 = vmul.f32 %v1827_v46, %v2346_v10  ;;  %v1994_v46 = vld [vmem:[%s3083_s10 + $0x10] sm:$0xff] }
 0x66b   :  { %2024 = vmatpush.msra.mxu1 %v1994_v46 }
 0x66c   :  { %v1833_v63 = vadd.f32 1e-05, %v1831_v14 }
 0x66e   :  { %2161 = vrsqrt.f32 %v1833_v63  ;;  %vm1841_vm2 = vweird.f32 %v1833_v63 }
 0x674   :  { %v2162_v59 = vpop.eup %2161 }
 0x675   :  { %v1836_v60 = vmul.f32 %v2162_v59, %v1833_v63  ;;  %vm1842_vm9 = vweird.f32 %v2162_v59  ;;  %v1993_v63 = vld [vmem:[%s3083_s10 + $0x8] sm:$0xff] }
 0x676   :  { %vm1843_vm3 = vmor %vm1841_vm2, %vm1842_vm9  ;;  %2025 = vmatpush.msra.mxu1 %v1993_v63 }
 0x677   :  { %v1837_v3 = vmul.f32 %v2162_v59, %v1836_v60 }
 0x679   :  { %v1838_v41 = vmul.f32 0.5, %v1837_v3 }
 0x67b   :  { %v1839_v26 = vsub.f32 1.5, %v1838_v41 }
 0x67d   :  { %v1840_v4 = vmul.f32 %v2162_v59, %v1839_v26  ;;  %v1992_v26 = vld [vmem:[%s3083_s10] sm:$0xff] }
 0x67e   :  { %2026 = vmatpush.msra.mxu1 %v1992_v26 }
 0x67f   :  { %v1844_v28 = vsel %vm1843_vm3, %v2162_v59, %v1840_v4 }
 0x680   :  { %v1855_v53 = vmul.f32 %v1844_v28, %v1821_v43 }
 0x682   :  { %v1860_v44 = vmul.f32 %v2119_v21, %v1855_v53 }
 0x683   :  { %v1830_v1 = vpop.xlane.xlu0 %1829 }
 0x684   :  { %v1832_v61 = vmul.f32 %v1830_v1, %v2346_v10  ;;  %v1865_v32 = vadd.f32 %v2120_v2, %v1860_v44  ;;  %v2121_v10 = vld [vmem:[%s3082_s9] ss:$0 sm:$0xff] }
 0x686   :  { %v1834_v8 = vadd.f32 1e-05, %v1832_v61  ;;  %2088 = vmatmul.msk.f32.vlgmr.msrb.gmra.mxu0 %vm76_vm0, %v1865_v32 }
 0x688   :  { %2163 = vrsqrt.f32 %v1834_v8  ;;  %vm1851_vm5 = vweird.f32 %v1834_v8 }
 0x68e   :  { %v2164_v9 = vpop.eup %2163 }
 0x68f   :  { %v1846_v5 = vmul.f32 %v2164_v9, %v1834_v8  ;;  %vm1852_vm4 = vweird.f32 %v2164_v9 }
 0x690   :  { %vm1853_vm6 = vmor %vm1851_vm5, %vm1852_vm4 }
 0x691   :  { %v1847_v54 = vmul.f32 %v2164_v9, %v1846_v5 }
 0x693   :  { %v1848_v27 = vmul.f32 0.5, %v1847_v54 }
 0x695   :  { %v1849_v31 = vsub.f32 1.5, %v1848_v27 }
 0x697   :  { %v1850_v39 = vmul.f32 %v2164_v9, %v1849_v31 }
 0x699   :  { %v1854_v19 = vsel %vm1853_vm6, %v2164_v9, %v1850_v39 }
 0x69a   :  { %v1856_v34 = vmul.f32 %v1854_v19, %v1822_v16 }
 0x69c   :  { %v1861_v56 = vmul.f32 %v2119_v21, %v1856_v34 }
 0x69e   :  { %v1866_v49 = vadd.f32 %v2120_v2, %v1861_v56 }
 0x6a0   :  { %2089 = vmatmul.msk.f32.gmra.mxu0 %vm76_vm0, %v1866_v49 }
 0x703   :  { %v1898_v45 = vpop.f32.mrf.mxu0 }
 0x704   :  { %v3016_v13 = vadd.f32 %v2121_v10, %v1898_v45 }
 0x706   :  { %v3019_v58 = vmul.f32 0.70710677, %v3016_v13 }
 0x708   :  { %v1908_v17 = vmul.f32 %v3019_v58, %v3019_v58 }
 0x70a   :  { %v1909_v62 = vmin.f32 %v1908_v17, 16.0  ;;  %v1904_v17 = vmul.f32 0.5, %v3016_v13 }
 0x70c   :  { %v1910_v20 = vmul.f32 2.1237322e-06, %v1909_v62  ;;  %v1921_v23 = vmul.f32 3.8918573e-05, %v1909_v62 }
 0x70e   :  { %v1911_v24 = vadd.f32 0.00028619796, %v1910_v20  ;;  %v1922_v25 = vadd.f32 0.001143296, %v1921_v23 }
 0x710   :  { %v1912_v29 = vmul.f32 %v1911_v24, %v1909_v62  ;;  %v1923_v30 = vmul.f32 %v1922_v25, %v1909_v62 }
 0x712   :  { %v1913_v33 = vadd.f32 0.0036580483, %v1912_v29  ;;  %v1924_v11 = vadd.f32 0.014752088, %v1923_v30 }
 0x714   :  { %v1925_v12 = vmul.f32 %v1924_v11, %v1909_v62  ;;  %v1914_v15 = vmul.f32 %v1913_v33, %v1909_v62 }
 0x716   :  { %v1926_v37 = vadd.f32 0.112945676, %v1925_v12  ;;  %v1915_v22 = vadd.f32 0.05243302, %v1914_v15 }
 0x718   :  { %v1927_v18 = vmul.f32 %v1926_v37, %v1909_v62  ;;  %v1916_v47 = vmul.f32 %v1915_v22, %v1909_v62 }
 0x71a   :  { %v1928_v6 = vadd.f32 0.4994258, %v1927_v18  ;;  %v1917_v55 = vadd.f32 0.18741608, %v1916_v47 }
 0x71c   :  { %v1929_v43 = vmul.f32 %v1928_v6, %v1909_v62  ;;  %v1918_v0 = vmul.f32 %v1917_v55, %v1909_v62  ;;  %v2122_v55 = vld [vmem:[%s3084_s11] ss:$0 sm:$0xff] }
 0x71d   :  { %v1901_v42 = vpop.f32.mrf.mxu0 }
 0x71e   :  { %v1930_v48 = vadd.f32 1.0, %v1929_v43  ;;  %v3032_v16 = vadd.f32 %v2121_v10, %v1901_v42  ;;  %v1919_v53 = vadd.f32 1.1283791, %v1918_v0 }
 0x720   :  { %2165 = vrcp.f32 %v1930_v48  ;;  %v3038_v51 = vmul.f32 0.70710677, %v3032_v16  ;;  %v1940_v2 = vand.u32 2147483647, %v1930_v48  ;;  %v1942_v44 = vand.u32 2147483648, %v1930_v48 }
 0x721   :  { %vm1936_vm10 = vweird.f32 %v1930_v48  ;;  %v1920_v27 = vmul.f32 %v1919_v53, %v3019_v58 }
 0x722   :  { %v1948_v57 = vmul.f32 %v3038_v51, %v3038_v51  ;;  %v1943_v5 = vor.u32 1.1754944e-38, %v1942_v44  ;;  %vm1941_vm12 = vcmp.eq.f32.partialorder %v1940_v2, 8.507059e+37 }
 0x724   :  { %v1949_v14 = vmin.f32 %v1948_v57, 16.0 }
 0x726   :  { %v2166_v59 = vpop.eup %2165  ;;  %v1950_v3 = vmul.f32 2.1237322e-06, %v1949_v14  ;;  %v1961_v41 = vmul.f32 3.8918573e-05, %v1949_v14 }
 0x727   :  { %v1932_v60 = vmul.f32 %v2166_v59, %v1930_v48  ;;  %vm1937_vm7 = vweird.f32 %v2166_v59  ;;  %v1905_v48 = vmul.f32 0.5, %v3032_v16 }
 0x728   :  { %v1951_v21 = vadd.f32 0.00028619796, %v1950_v3  ;;  %v1962_v28 = vadd.f32 0.001143296, %v1961_v41  ;;  %vm1938_vm11 = vmor %vm1936_vm10, %vm1937_vm7 }
 0x729   :  { %v1933_v4 = vsub.f32 1.0, %v1932_v60 }
 0x72a   :  { %v1952_v61 = vmul.f32 %v1951_v21, %v1949_v14  ;;  %v1963_v32 = vmul.f32 %v1962_v28, %v1949_v14 }
 0x72b   :  { %v1934_v1 = vmul.f32 %v2166_v59, %v1933_v4 }
 0x72c   :  { %v1964_v9 = vadd.f32 0.014752088, %v1963_v32  ;;  %v1953_v54 = vadd.f32 0.0036580483, %v1952_v61 }
 0x72d   :  { %v1935_v8 = vadd.f32 %v2166_v59, %v1934_v1 }
 0x72e   :  { %v1965_v39 = vmul.f32 %v1964_v9, %v1949_v14  ;;  %v1954_v49 = vmul.f32 %v1953_v54, %v1949_v14 }
 0x72f   :  { %v1939_v31 = vsel %vm1938_vm11, %v2166_v59, %v1935_v8 }
 0x730   :  { %v1944_v19 = vsel %vm1941_vm12, %v1943_v5, %v1939_v31  ;;  %v1966_v56 = vadd.f32 0.112945676, %v1965_v39  ;;  %v1955_v23 = vadd.f32 0.05243302, %v1954_v49 }
 0x731   :  { %v1945_v34 = vmul.f32 %v1944_v19, %v1920_v27 }
 0x732   :  { %v1967_v45 = vmul.f32 %v1966_v56, %v1949_v14  ;;  %v1956_v58 = vmul.f32 %v1955_v23, %v1949_v14 }
 0x733   :  { %v2090_v10 = vclamps-f32 %v1945_v34, 1.0 }
 0x734   :  { %v1968_v20 = vadd.f32 0.4994258, %v1967_v45  ;;  %v1957_v30 = vadd.f32 0.18741608, %v1956_v58 }
 0x735   :  { %v1988_v62 = vadd.f32 1.0, %v2090_v10 }
 0x736   :  { %v1969_v25 = vmul.f32 %v1968_v20, %v1949_v14  ;;  %v1958_v11 = vmul.f32 %v1957_v30, %v1949_v14 }
 0x737   :  { %v1990_v24 = vmul.f32 %v1988_v62, %v1904_v17 }
 0x738   :  { %v1970_v29 = vadd.f32 1.0, %v1969_v25  ;;  %v1959_v18 = vadd.f32 1.1283791, %v1958_v11 }
 0x739   :  { %2092 = vmatmul.msk.f32.vlgmr.msra.gmra.mxu1 %vm2004_vm13, %v1990_v24 }
 0x73a   :  { %2167 = vrcp.f32 %v1970_v29  ;;  %v1982_v37 = vand.u32 2147483648, %v1970_v29  ;;  %v1980_v13 = vand.u32 2147483647, %v1970_v29  ;;  %vm1976_vm15 = vweird.f32 %v1970_v29 }
 0x73b   :  { %v1960_v7 = vmul.f32 %v1959_v18, %v3038_v51 }
 0x73c   :  { %v1983_v6 = vor.u32 1.1754944e-38, %v1982_v37  ;;  %vm1981_vm1 = vcmp.eq.f32.partialorder %v1980_v13, 8.507059e+37 }
 0x740   :  { %v2168_v33 = vpop.eup %2167 }
 0x741   :  { %v1972_v12 = vmul.f32 %v2168_v33, %v1970_v29  ;;  %vm1977_vm14 = vweird.f32 %v2168_v33 }
 0x742   :  { %vm1978_vm8 = vmor %vm1976_vm15, %vm1977_vm14 }
 0x743   :  { %v1973_v15 = vsub.f32 1.0, %v1972_v12 }
 0x745   :  { %v1974_v40 = vmul.f32 %v2168_v33, %v1973_v15 }
 0x747   :  { %v1975_v22 = vadd.f32 %v2168_v33, %v1974_v40 }
 0x749   :  { %v1979_v43 = vsel %vm1978_vm8, %v2168_v33, %v1975_v22 }
 0x74a   :  { %v1984_v42 = vsel %vm1981_vm1, %v1983_v6, %v1979_v43 }
 0x74b   :  { %v1985_v50 = vmul.f32 %v1984_v42, %v1960_v7 }
 0x74d   :  { %v2091_v47 = vclamps-f32 %v1985_v50, 1.0 }
 0x74f   :  { %v1989_v38 = vadd.f32 1.0, %v2091_v47 }
 0x751   :  { %v1991_v52 = vmul.f32 %v1989_v38, %v1905_v48 }
 0x753   :  { %2093 = vmatmul.msk.f32.gmra.mxu1 %vm2004_vm13, %v1991_v52 }
 0x7b6   :  { %v2028_v57 = vpop.f32.mrf.mxu1 }
 0x7b7   :  { %v2029_v46 = vadd.f32 %v2122_v55, %v2028_v57 }
 0x7b9   :  { %v2034_v14 = vadd.f32 %v2029_v46, %v2977_v36 }
 0x7bb   :  { %v2036_v51 = vmul.f32 0.70710677, %v2034_v14 }
 0x7bd   :  { %2038 = vst.msk [vmem:[#allocation7] sm:$0xff] %vm76_vm0, %v2036_v51 }
 0x7d0   :  { %v2031_v63 = vpop.f32.mrf.mxu1 }
 0x7d1   :  { %v2032_v59 = vadd.f32 %v2122_v55, %v2031_v63 }
 0x7d3   :  { %v2035_v16 = vadd.f32 %v2032_v59, %v2981_v35 }
 0x7d5   :  { %v2037_v0 = vmul.f32 0.70710677, %v2035_v16 }
 0x7d7   :  { %2039 = vst.msk [vmem:[#allocation7 + $0x8] sm:$0xff] %vm76_vm0, %v2037_v0 }
 0x7d8   :  { %2052 = dma.vmem_to_hbm [thread:$0]  %s2045_s27, 256, %s2047_s14, [#allocation4], %s2250_s29, %s2250_s29, %s2251_s30  }
 0x7d9   :  { %2247 = dma.done.wait [#allocation4], 256  }
 0x7da   :  { %2248 = vsyncadd [#allocation4], 4294967040 }
 0x7db   :  { %2057 = vsyncpa [#allocation3], 1 }
 0x7dc   :  { %2058 = vsyncpa [#allocation6], 1 }
 0x7dd   :  { %2059 = vsyncpa [#allocation4], 1 }

</bundles_post_ra>
